<compile_context>
chip_gen: v7x
topology: tpu7x:2x2x1
jax: 0.10.0
libtpu: 0.0.40
codegen_flags: <defaults>
</compile_context>

<pallas_src>
import functools

import jax
import jax.numpy as jnp
from jax.experimental import pallas as pl
from jax.experimental.pallas import tpu as pltpu

IN_DIM = 32 * 32 * 3   # 3072
HID = 200
OUT_DIM = 10

HID_PAD = 256          # lane-aligned hidden width (zero-padded)
OUT_PAD = 128          # lane-dense output width (zero-padded, sliced after)


def tanhnet_kernel(x_ref, w1_ref, b1_ref, w2_ref, b2_ref, w3_ref, b3_ref, o_ref):
    # One batch tile per grid step; weights/biases resident across steps.
    x = x_ref[...]                                                        # [TB, 3072] bf16
    h1 = jnp.tanh(
        jnp.dot(x, w1_ref[...], preferred_element_type=jnp.float32) + b1_ref[...]
    )                                                                     # [TB, 256] f32
    h2 = jnp.tanh(
        jnp.dot(h1.astype(jnp.bfloat16), w2_ref[...],
                preferred_element_type=jnp.float32) + b2_ref[...]
    )                                                                     # [TB, 256] f32
    out = jnp.dot(h2.astype(jnp.bfloat16), w3_ref[...],
                  preferred_element_type=jnp.float32) + b3_ref[...]       # [TB, 128] f32
    o_ref[...] = out.astype(o_ref.dtype)


def _pad_to(a, shape):
    pads = [(0, t - s) for s, t in zip(a.shape, shape)]
    return jnp.pad(a, pads)


@functools.partial(jax.jit, static_argnames=("tb",))
def tanhnet_forward(x_nchw, params, *, tb=128):
    """x_nchw: [B, 3, 32, 32] float32. Returns [B, 10] float32."""
    B = x_nchw.shape[0]
    x = x_nchw.reshape(B, -1)  # same semantics as torch .view(B, -1) on NCHW

    # Batch tile: multiple of 8 sublanes, capped at `tb`; pad B to a full tile.
    TB = tb if B >= tb else ((B + 7) // 8) * 8
    B_pad = ((B + TB - 1) // TB) * TB
    n_tiles = B_pad // TB

    w1, b1, w2, b2, w3, b3 = params

    # Zero-pad to lane-friendly widths; cast MXU operands to bf16.
    xp = _pad_to(x, (B_pad, IN_DIM)).astype(jnp.bfloat16)
    w1p = _pad_to(w1, (IN_DIM, HID_PAD)).astype(jnp.bfloat16)
    w2p = _pad_to(w2, (HID_PAD, HID_PAD)).astype(jnp.bfloat16)
    w3p = _pad_to(w3, (HID_PAD, OUT_PAD)).astype(jnp.bfloat16)
    b1p = _pad_to(b1, (1, HID_PAD)).astype(jnp.float32)
    b2p = _pad_to(b2, (1, HID_PAD)).astype(jnp.float32)
    b3p = _pad_to(b3, (1, OUT_PAD)).astype(jnp.float32)

    resident = lambda shape: pl.BlockSpec(shape, lambda i: (0,) * len(shape))

    # VMEM footprint: everything is conservatively counted with the default
    # 2-deep pipeline buffering (even resident blocks allocate two buffers),
    # plus headroom for compiler temporaries / the f32 intermediates.
    weight_bytes = (IN_DIM * HID_PAD + HID_PAD * HID_PAD + HID_PAD * OUT_PAD) * 2
    bias_bytes = (2 * HID_PAD + OUT_PAD) * 4
    vmem_bytes = int(
        2 * TB * IN_DIM * 2                # 2x x tiles (bf16)
        + 2 * TB * OUT_PAD * 4             # 2x out tiles (f32)
        + 2 * (weight_bytes + bias_bytes)  # resident params (double-buffer alloc)
        + (6 << 20)                        # compiler headroom / f32 temporaries
    )

    flops = 2 * B_pad * (IN_DIM * HID_PAD + HID_PAD * HID_PAD + HID_PAD * OUT_PAD)
    bytes_accessed = (
        xp.size * 2
        + weight_bytes
        + bias_bytes
        + B_pad * OUT_PAD * 4
    )

    out_pad = pl.pallas_call(
        tanhnet_kernel,
        out_shape=jax.ShapeDtypeStruct((B_pad, OUT_PAD), jnp.float32),
        grid=(n_tiles,),
        in_specs=[
            pl.BlockSpec((TB, IN_DIM), lambda i: (i, 0)),   # batch-tiled input
            resident((IN_DIM, HID_PAD)),
            resident((1, HID_PAD)),
            resident((HID_PAD, HID_PAD)),
            resident((1, HID_PAD)),
            resident((HID_PAD, OUT_PAD)),
            resident((1, OUT_PAD)),
        ],
        out_specs=pl.BlockSpec((TB, OUT_PAD), lambda i: (i, 0)),
        compiler_params=pltpu.CompilerParams(
            dimension_semantics=("parallel",),
            vmem_limit_bytes=vmem_bytes,
        ),
        cost_estimate=pl.CostEstimate(
            flops=flops,
            transcendentals=2 * B_pad * HID_PAD,
            bytes_accessed=bytes_accessed,
        ),
    )(xp, w1p, b1p, w2p, b2p, w3p, b3p)

    return out_pad[:B, :OUT_DIM]


def init_params(key):
    """Deterministic init matching nn.Linear's U(-1/sqrt(fan_in), 1/sqrt(fan_in))."""
    ks = jax.random.split(key, 6)

    def linear(kw, kb, fan_in, fan_out):
        bound = 1.0 / jnp.sqrt(jnp.float32(fan_in))
        w = jax.random.uniform(kw, (fan_in, fan_out), jnp.float32, -bound, bound)
        b = jax.random.uniform(kb, (1, fan_out), jnp.float32, -bound, bound)
        return w, b

    w1, b1 = linear(ks[0], ks[1], IN_DIM, HID)
    w2, b2 = linear(ks[2], ks[3], HID, HID)
    w3, b3 = linear(ks[4], ks[5], HID, OUT_DIM)
    return (w1, b1, w2, b2, w3, b3)


def reference_forward(x_nchw, params):
    w1, b1, w2, b2, w3, b3 = params
    x = x_nchw.reshape(x_nchw.shape[0], -1)
    h1 = jnp.tanh(x @ w1 + b1)
    h2 = jnp.tanh(h1 @ w2 + b2)
    return h2 @ w3 + b3


if __name__ == "__main__":
    key = jax.random.PRNGKey(0)
    k_x, k_p = jax.random.split(key)

    B = 8
    x = jax.random.normal(k_x, (B, 3, 32, 32), jnp.float32)
    params = init_params(k_p)

    out = tanhnet_forward(x, params)
    out = jax.block_until_ready(out)

    ref = reference_forward(x, params)
    assert out.shape == (B, OUT_DIM)
    # bf16 MXU operands (f32 accumulation) -> relax tolerance vs f32 reference.
    assert jnp.allclose(out, ref, atol=5e-2, rtol=5e-2), "mismatch vs JAX reference"

    print("KERNEL_OK")
</pallas_src>

<mosaic_0001>
module attributes {stable_mosaic.version = 11 : i64} {
  func.func @tanhnet_kernel(%arg0: i32, %arg1: memref<8x3072xbf16, #tpu.memory_space<vmem>>, %arg2: memref<3072x256xbf16, #tpu.memory_space<vmem>>, %arg3: memref<1x256xf32, #tpu.memory_space<vmem>>, %arg4: memref<256x256xbf16, #tpu.memory_space<vmem>>, %arg5: memref<1x256xf32, #tpu.memory_space<vmem>>, %arg6: memref<256x128xbf16, #tpu.memory_space<vmem>>, %arg7: memref<1x128xf32, #tpu.memory_space<vmem>>, %arg8: memref<8x128xf32, #tpu.memory_space<vmem>>) attributes {dimension_semantics = [#tpu.dimension_semantics<parallel>], iteration_bounds = array<i64: 1>, scalar_prefetch = 0 : i64, scratch_operands = 0 : i64, tpu.core_type = #tpu.core_type<tc>, window_params = [{transform_indices = @transform_0, window_bounds = array<i64: 8, 3072>}, {pipeline_mode = #tpu.pipeline_mode<synchronous>, transform_indices = @transform_1, window_bounds = array<i64: 3072, 256>}, {pipeline_mode = #tpu.pipeline_mode<synchronous>, transform_indices = @transform_2, window_bounds = array<i64: 1, 256>}, {pipeline_mode = #tpu.pipeline_mode<synchronous>, transform_indices = @transform_3, window_bounds = array<i64: 256, 256>}, {pipeline_mode = #tpu.pipeline_mode<synchronous>, transform_indices = @transform_4, window_bounds = array<i64: 1, 256>}, {pipeline_mode = #tpu.pipeline_mode<synchronous>, transform_indices = @transform_5, window_bounds = array<i64: 256, 128>}, {pipeline_mode = #tpu.pipeline_mode<synchronous>, transform_indices = @transform_6, window_bounds = array<i64: 1, 128>}, {transform_indices = @transform_7, window_bounds = array<i64: 8, 128>}]} {
    %c0 = arith.constant 0 : index
    %c0_0 = arith.constant 0 : index
    %0 = vector.load %arg1[%c0, %c0_0] : memref<8x3072xbf16, #tpu.memory_space<vmem>>, vector<8x3072xbf16>
    %c0_1 = arith.constant 0 : index
    %c0_2 = arith.constant 0 : index
    %1 = vector.load %arg2[%c0_1, %c0_2] : memref<3072x256xbf16, #tpu.memory_space<vmem>>, vector<3072x256xbf16>
    %cst = arith.constant dense<0.000000e+00> : vector<8x256xf32>
    %2 = tpu.matmul %0, %1, %cst {dimension_numbers = #tpu.dot_dimension_numbers<[1], [0], [0], [1], [0, 0, 1, 1], [], []>} : vector<8x3072xbf16>, vector<3072x256xbf16>, vector<8x256xf32> -> vector<8x256xf32>
    %c0_3 = arith.constant 0 : index
    %c0_4 = arith.constant 0 : index
    %3 = vector.load %arg3[%c0_3, %c0_4] : memref<1x256xf32, #tpu.memory_space<vmem>>, vector<1x256xf32>
    %4 = vector.broadcast %3 : vector<1x256xf32> to vector<8x256xf32>
    %5 = arith.addf %2, %4 : vector<8x256xf32>
    %6 = math.tanh %5 : vector<8x256xf32>
    %7 = arith.truncf %6 : vector<8x256xf32> to vector<8x256xbf16>
    %c0_5 = arith.constant 0 : index
    %c0_6 = arith.constant 0 : index
    %8 = vector.load %arg4[%c0_5, %c0_6] : memref<256x256xbf16, #tpu.memory_space<vmem>>, vector<256x256xbf16>
    %cst_7 = arith.constant dense<0.000000e+00> : vector<8x256xf32>
    %9 = tpu.matmul %7, %8, %cst_7 {dimension_numbers = #tpu.dot_dimension_numbers<[1], [0], [0], [1], [0, 0, 1, 1], [], []>} : vector<8x256xbf16>, vector<256x256xbf16>, vector<8x256xf32> -> vector<8x256xf32>
    %c0_8 = arith.constant 0 : index
    %c0_9 = arith.constant 0 : index
    %10 = vector.load %arg5[%c0_8, %c0_9] : memref<1x256xf32, #tpu.memory_space<vmem>>, vector<1x256xf32>
    %11 = vector.broadcast %10 : vector<1x256xf32> to vector<8x256xf32>
    %12 = arith.addf %9, %11 : vector<8x256xf32>
    %13 = math.tanh %12 : vector<8x256xf32>
    %14 = arith.truncf %13 : vector<8x256xf32> to vector<8x256xbf16>
    %c0_10 = arith.constant 0 : index
    %c0_11 = arith.constant 0 : index
    %15 = vector.load %arg6[%c0_10, %c0_11] : memref<256x128xbf16, #tpu.memory_space<vmem>>, vector<256x128xbf16>
    %cst_12 = arith.constant dense<0.000000e+00> : vector<8x128xf32>
    %16 = tpu.matmul %14, %15, %cst_12 {dimension_numbers = #tpu.dot_dimension_numbers<[1], [0], [0], [1], [0, 0, 1, 1], [], []>} : vector<8x256xbf16>, vector<256x128xbf16>, vector<8x128xf32> -> vector<8x128xf32>
    %c0_13 = arith.constant 0 : index
    %c0_14 = arith.constant 0 : index
    %17 = vector.load %arg7[%c0_13, %c0_14] : memref<1x128xf32, #tpu.memory_space<vmem>>, vector<1x128xf32>
    %18 = vector.broadcast %17 : vector<1x128xf32> to vector<8x128xf32>
    %19 = arith.addf %16, %18 : vector<8x128xf32>
    %c0_15 = arith.constant 0 : index
    %c0_16 = arith.constant 0 : index
    %20 = vector.load %arg8[%c0_15, %c0_16] : memref<8x128xf32, #tpu.memory_space<vmem>>, vector<8x128xf32>
    tpu.vector_store %arg8[%c0_15, %c0_16], %19 {strides = array<i32>} : memref<8x128xf32, #tpu.memory_space<vmem>>, vector<8x128xf32>,
    return
  }
  func.func @transform_0(%arg0: i32) -> (i32, i32) {
    %c0_i32 = arith.constant 0 : i32
    %c0_i32_0 = arith.constant 0 : i32
    return %arg0, %c0_i32 : i32, i32
  }
  func.func @transform_1(%arg0: i32) -> (i32, i32) {
    %c0_i32 = arith.constant 0 : i32
    %c0_i32_0 = arith.constant 0 : i32
    %c0_i32_1 = arith.constant 0 : i32
    return %c0_i32, %c0_i32_0 : i32, i32
  }
  func.func @transform_2(%arg0: i32) -> (i32, i32) {
    %c0_i32 = arith.constant 0 : i32
    %c0_i32_0 = arith.constant 0 : i32
    %c0_i32_1 = arith.constant 0 : i32
    return %c0_i32, %c0_i32_0 : i32, i32
  }
  func.func @transform_3(%arg0: i32) -> (i32, i32) {
    %c0_i32 = arith.constant 0 : i32
    %c0_i32_0 = arith.constant 0 : i32
    %c0_i32_1 = arith.constant 0 : i32
    return %c0_i32, %c0_i32_0 : i32, i32
  }
  func.func @transform_4(%arg0: i32) -> (i32, i32) {
    %c0_i32 = arith.constant 0 : i32
    %c0_i32_0 = arith.constant 0 : i32
    %c0_i32_1 = arith.constant 0 : i32
    return %c0_i32, %c0_i32_0 : i32, i32
  }
  func.func @transform_5(%arg0: i32) -> (i32, i32) {
    %c0_i32 = arith.constant 0 : i32
    %c0_i32_0 = arith.constant 0 : i32
    %c0_i32_1 = arith.constant 0 : i32
    return %c0_i32, %c0_i32_0 : i32, i32
  }
  func.func @transform_6(%arg0: i32) -> (i32, i32) {
    %c0_i32 = arith.constant 0 : i32
    %c0_i32_0 = arith.constant 0 : i32
    %c0_i32_1 = arith.constant 0 : i32
    return %c0_i32, %c0_i32_0 : i32, i32
  }
  func.func @transform_7(%arg0: i32) -> (i32, i32) {
    %c0_i32 = arith.constant 0 : i32
    %c0_i32_0 = arith.constant 0 : i32
    return %arg0, %c0_i32 : i32, i32
  }
}

</mosaic_0001>

<bundles_post_ra>
// kernel: tanhnet_forward.1
= control target key start
LH: loop header
LB: loop body
LE: loop exit
PB: predicated region body
PF: predicated region fallthrough
CT: control target
= control target key end

     0   :  { %s6049_s0 = inlined_call_operand.vmem [shape: bf16[8,3072], index: 0, kind: input, shape index: {}]   ;;  %s6050_s1 = inlined_call_operand.vmem [shape: bf16[3072,256], index: 1, kind: input, shape index: {}]   ;;  %s6051_s2 = inlined_call_operand.vmem [shape: f32[1,256], index: 2, kind: input, shape index: {}]   ;;  %s6052_s3 = inlined_call_operand.vmem [shape: bf16[256,256], index: 3, kind: input, shape index: {}]   ;;  %s6053_s4 = inlined_call_operand.vmem [shape: f32[1,256], index: 4, kind: input, shape index: {}]   ;;  %s6054_s5 = inlined_call_operand.vmem [shape: bf16[256,128], index: 5, kind: input, shape index: {}]   ;;  %s6055_s6 = inlined_call_operand.vmem [shape: f32[1,128], index: 6, kind: input, shape index: {}]   ;;  %s6056_s7 = inlined_call_operand.hbm [shape: f32[8,128], index: 7, kind: output, shape index: {}]  }
   0x1   :  { %v3899_v0 = vld [vmem:[%s6050_s1 + $0x4] ss:$8 sps:$4 sm:$0xff]   ;;  %v3903_v2 = vld [vmem:[%s6050_s1] ss:$8 sps:$4 sm:$0xff]   ;;  %v3905_v4 = vld [vmem:[%s6050_s1 + $0x14] ss:$8 sps:$4 sm:$0xff]  }
   0x2   :  { %v3901_v1 = vld [vmem:[%s6050_s1 + $0x504] ss:$8 sps:$4 sm:$0xff]   ;;  %2440 = vmatprep.subr.bf16.mxu1 %v3899_v0  ;;  %v3904_v3 = vld [vmem:[%s6050_s1 + $0x500] ss:$8 sps:$4 sm:$0xff]   ;;  %v3907_v5 = vld [vmem:[%s6050_s1 + $0x514] ss:$8 sps:$4 sm:$0xff]  }
   0x3   :  { %2645 = vmatprep.subr.bf16.mxu0 %v3901_v1  ;;  %2441 = vmatpush1.bf16.msra.mxu1 %v3903_v2  ;;  %v3909_v6 = vld [vmem:[%s6050_s1 + $0x10] ss:$8 sps:$4 sm:$0xff]   ;;  %v3911_v8 = vld [vmem:[%s6050_s1 + $0x24] ss:$8 sps:$4 sm:$0xff]   ;;  %v3915_v10 = vld [vmem:[%s6050_s1 + $0x20] ss:$8 sps:$4 sm:$0xff]  }
   0x4   :  { %2646 = vmatpush1.bf16.msra.mxu0 %v3904_v3  ;;  %2442 = vmatprep.subr.bf16.mxu1 %v3905_v4  ;;  %v3910_v7 = vld [vmem:[%s6050_s1 + $0x510] ss:$8 sps:$4 sm:$0xff]   ;;  %v3913_v9 = vld [vmem:[%s6050_s1 + $0x524] ss:$8 sps:$4 sm:$0xff]   ;;  %v3916_v11 = vld [vmem:[%s6050_s1 + $0x520] ss:$8 sps:$4 sm:$0xff]  }
   0x5   :  { %2647 = vmatprep.subr.bf16.mxu0 %v3907_v5  ;;  %v3917_v12 = vld [vmem:[%s6050_s1 + $0x34] ss:$8 sps:$4 sm:$0xff]   ;;  %v3921_v14 = vld [vmem:[%s6050_s1 + $0x30] ss:$8 sps:$4 sm:$0xff]   ;;  %v3923_v16 = vld [vmem:[%s6050_s1 + $0x44] ss:$8 sps:$4 sm:$0xff]  }
   0x6   :  { %v3919_v13 = vld [vmem:[%s6050_s1 + $0x534] ss:$8 sps:$4 sm:$0xff]   ;;  %v3922_v15 = vld [vmem:[%s6050_s1 + $0x530] ss:$8 sps:$4 sm:$0xff]   ;;  %v3925_v17 = vld [vmem:[%s6050_s1 + $0x544] ss:$8 sps:$4 sm:$0xff]  }
   0x7   :  { %2443 = vmatpush1.bf16.msra.mxu1 %v3909_v6  ;;  %v3927_v18 = vld [vmem:[%s6050_s1 + $0x40] ss:$8 sps:$4 sm:$0xff]   ;;  %v3929_v20 = vld [vmem:[%s6050_s1 + $0x54] ss:$8 sps:$4 sm:$0xff]   ;;  %v3933_v22 = vld [vmem:[%s6050_s1 + $0x50] ss:$8 sps:$4 sm:$0xff]  }
   0x8   :  { %2648 = vmatpush1.bf16.msra.mxu0 %v3910_v7  ;;  %2444 = vmatprep.subr.bf16.mxu1 %v3911_v8  ;;  %v3928_v19 = vld [vmem:[%s6050_s1 + $0x540] ss:$8 sps:$4 sm:$0xff]   ;;  %v3931_v21 = vld [vmem:[%s6050_s1 + $0x554] ss:$8 sps:$4 sm:$0xff]   ;;  %v3934_v23 = vld [vmem:[%s6050_s1 + $0x550] ss:$8 sps:$4 sm:$0xff]  }
   0x9   :  { %2649 = vmatprep.subr.bf16.mxu0 %v3913_v9  ;;  %v3935_v24 = vld [vmem:[%s6050_s1 + $0x64] ss:$8 sps:$4 sm:$0xff]   ;;  %v3939_v26 = vld [vmem:[%s6050_s1 + $0x60] ss:$8 sps:$4 sm:$0xff]   ;;  %v3941_v28 = vld [vmem:[%s6050_s1 + $0x74] ss:$8 sps:$4 sm:$0xff]  }
   0xa   :  { %v3937_v25 = vld [vmem:[%s6050_s1 + $0x564] ss:$8 sps:$4 sm:$0xff]   ;;  %v3940_v27 = vld [vmem:[%s6050_s1 + $0x560] ss:$8 sps:$4 sm:$0xff]   ;;  %v3943_v29 = vld [vmem:[%s6050_s1 + $0x574] ss:$8 sps:$4 sm:$0xff]  }
   0xb   :  { %2445 = vmatpush1.bf16.msra.mxu1 %v3915_v10  ;;  %v3945_v30 = vld [vmem:[%s6050_s1 + $0x70] ss:$8 sps:$4 sm:$0xff]   ;;  %v3947_v32 = vld [vmem:[%s6050_s1 + $0x84] ss:$8 sps:$4 sm:$0xff]   ;;  %v3951_v34 = vld [vmem:[%s6050_s1 + $0x80] ss:$8 sps:$4 sm:$0xff]  }
   0xc   :  { %2650 = vmatpush1.bf16.msra.mxu0 %v3916_v11  ;;  %2446 = vmatprep.subr.bf16.mxu1 %v3917_v12  ;;  %v3946_v31 = vld [vmem:[%s6050_s1 + $0x570] ss:$8 sps:$4 sm:$0xff]   ;;  %v3949_v33 = vld [vmem:[%s6050_s1 + $0x584] ss:$8 sps:$4 sm:$0xff]   ;;  %v3952_v35 = vld [vmem:[%s6050_s1 + $0x580] ss:$8 sps:$4 sm:$0xff]  }
   0xd   :  { %2651 = vmatprep.subr.bf16.mxu0 %v3919_v13  ;;  %v3953_v36 = vld [vmem:[%s6050_s1 + $0x94] ss:$8 sps:$4 sm:$0xff]   ;;  %v3957_v38 = vld [vmem:[%s6050_s1 + $0x90] ss:$8 sps:$4 sm:$0xff]   ;;  %v3959_v40 = vld [vmem:[%s6050_s1 + $0xa4] ss:$8 sps:$4 sm:$0xff]  }
   0xe   :  { %v3955_v37 = vld [vmem:[%s6050_s1 + $0x594] ss:$8 sps:$4 sm:$0xff]   ;;  %v3958_v39 = vld [vmem:[%s6050_s1 + $0x590] ss:$8 sps:$4 sm:$0xff]   ;;  %v3961_v41 = vld [vmem:[%s6050_s1 + $0x5a4] ss:$8 sps:$4 sm:$0xff]  }
   0xf   :  { %2447 = vmatpush1.bf16.msra.mxu1 %v3921_v14  ;;  %v3963_v42 = vld [vmem:[%s6050_s1 + $0xa0] ss:$8 sps:$4 sm:$0xff]   ;;  %v3965_v44 = vld [vmem:[%s6050_s1 + $0xb4] ss:$8 sps:$4 sm:$0xff]   ;;  %v3969_v47 = vld [vmem:[%s6050_s1 + $0xb0] ss:$8 sps:$4 sm:$0xff]  }
  0x10   :  { %2652 = vmatpush1.bf16.msra.mxu0 %v3922_v15  ;;  %2448 = vmatprep.subr.bf16.mxu1 %v3923_v16  ;;  %v3964_v43 = vld [vmem:[%s6050_s1 + $0x5a0] ss:$8 sps:$4 sm:$0xff]   ;;  %v3967_v45 = vld [vmem:[%s6050_s1 + $0x5b4] ss:$8 sps:$4 sm:$0xff]   ;;  %v3970_v49 = vld [vmem:[%s6050_s1 + $0x5b0] ss:$8 sps:$4 sm:$0xff]  }
  0x11   :  { %2653 = vmatprep.subr.bf16.mxu0 %v3925_v17  ;;  %v28_v46 = vld [vmem:[%s6049_s0] sm:$0xff]  ;;  %v33_v50 = vld [vmem:[%s6049_s0 + $0x28] sm:$0xff]  ;;  %v3977_v56 = vld [vmem:[%s6050_s1 + $0xd4] ss:$8 sps:$4 sm:$0xff]  }
  0x12   :  { %v3376_v48 = vcombine.high %v28_v46, %v28_v46  ;;  %v3971_v51 = vld [vmem:[%s6050_s1 + $0xc4] ss:$8 sps:$4 sm:$0xff]   ;;  %v3386_v53 = vcombine.high %v33_v50, %v33_v50  ;;  %v3975_v54 = vld [vmem:[%s6050_s1 + $0xc0] ss:$8 sps:$4 sm:$0xff]   ;;  %v3979_v57 = vld [vmem:[%s6050_s1 + $0x5d4] ss:$8 sps:$4 sm:$0xff]   ;;  %v3375_v6 = vcombine.low %v28_v46, %v28_v46  ;;  %v3385_v7 = vcombine.low %v33_v50, %v33_v50 }
  0x13   :  { %2449 = vmatpush1.bf16.msra.mxu1 %v3927_v18  ;;  %v3973_v52 = vld [vmem:[%s6050_s1 + $0x5c4] ss:$8 sps:$4 sm:$0xff]   ;;  %v3976_v55 = vld [vmem:[%s6050_s1 + $0x5c0] ss:$8 sps:$4 sm:$0xff]   ;;  %v3981_v58 = vld [vmem:[%s6050_s1 + $0xd0] ss:$8 sps:$4 sm:$0xff]  }
  0x14   :  { %2654 = vmatpush1.bf16.msra.mxu0 %v3928_v19  ;;  %2450 = vmatprep.subr.bf16.mxu1 %v3929_v20  ;;  %v3982_v59 = vld [vmem:[%s6050_s1 + $0x5d0] ss:$8 sps:$4 sm:$0xff]   ;;  %v3983_v60 = vld [vmem:[%s6050_s1 + $0xe4] ss:$8 sps:$4 sm:$0xff]   ;;  %v3987_v62 = vld [vmem:[%s6050_s1 + $0xe0] ss:$8 sps:$4 sm:$0xff]  }
  0x15   :  { %2655 = vmatprep.subr.bf16.mxu0 %v3931_v21  ;;  %2472 = vmatprep.mubr.bf16.mxu1 %v3376_v48  ;;  %v3985_v61 = vld [vmem:[%s6050_s1 + $0x5e4] ss:$8 sps:$4 sm:$0xff]   ;;  %v3988_v63 = vld [vmem:[%s6050_s1 + $0x5e0] ss:$8 sps:$4 sm:$0xff]   ;;  %v3989_v0 = vld [vmem:[%s6050_s1 + $0xf4] ss:$8 sps:$4 sm:$0xff]  }
  0x16   :  { %2677 = vmatprep.mubr.bf16.mxu0 %v3386_v53  ;;  %v3991_v1 = vld [vmem:[%s6050_s1 + $0x5f4] ss:$8 sps:$4 sm:$0xff]   ;;  %v3993_v2 = vld [vmem:[%s6050_s1 + $0xf0] ss:$8 sps:$4 sm:$0xff]   ;;  %v3999_v4 = vld [vmem:[%s6050_s1 + $0x104] ss:$8 sps:$4 sm:$0xff]  }
  0x17   :  { %2451 = vmatpush1.bf16.msra.mxu1 %v3933_v22  ;;  %v3994_v3 = vld [vmem:[%s6050_s1 + $0x5f0] ss:$8 sps:$4 sm:$0xff]   ;;  %v4004_v5 = vld [vmem:[%s6050_s1 + $0x604] ss:$8 sps:$4 sm:$0xff]   ;;  %v3997_v8 = vld [vmem:[%s6050_s1 + $0x100] ss:$8 sps:$4 sm:$0xff]  }
  0x18   :  { %2656 = vmatpush1.bf16.msra.mxu0 %v3934_v23  ;;  %2452 = vmatprep.subr.bf16.mxu1 %v3935_v24  ;;  %v4002_v9 = vld [vmem:[%s6050_s1 + $0x600] ss:$8 sps:$4 sm:$0xff]   ;;  %v4007_v10 = vld [vmem:[%s6050_s1 + $0x114] ss:$8 sps:$4 sm:$0xff]   ;;  %v4005_v12 = vld [vmem:[%s6050_s1 + $0x110] ss:$8 sps:$4 sm:$0xff]  }
  0x19   :  { %2657 = vmatprep.subr.bf16.mxu0 %v3937_v25  ;;  %v4010_v11 = vld [vmem:[%s6050_s1 + $0x614] ss:$8 sps:$4 sm:$0xff]   ;;  %v4008_v13 = vld [vmem:[%s6050_s1 + $0x610] ss:$8 sps:$4 sm:$0xff]   ;;  %v4013_v14 = vld [vmem:[%s6050_s1 + $0x124] ss:$8 sps:$4 sm:$0xff]  }
  0x1a   :  { %v4016_v15 = vld [vmem:[%s6050_s1 + $0x624] ss:$8 sps:$4 sm:$0xff]   ;;  %v4011_v16 = vld [vmem:[%s6050_s1 + $0x120] ss:$8 sps:$4 sm:$0xff]   ;;  %v4019_v18 = vld [vmem:[%s6050_s1 + $0x134] ss:$8 sps:$4 sm:$0xff]  }
  0x1b   :  { %2453 = vmatpush1.bf16.msra.mxu1 %v3939_v26  ;;  %v4014_v17 = vld [vmem:[%s6050_s1 + $0x620] ss:$8 sps:$4 sm:$0xff]   ;;  %v4022_v19 = vld [vmem:[%s6050_s1 + $0x634] ss:$8 sps:$4 sm:$0xff]   ;;  %v4017_v20 = vld [vmem:[%s6050_s1 + $0x130] ss:$8 sps:$4 sm:$0xff]  }
  0x1c   :  { %2658 = vmatpush1.bf16.msra.mxu0 %v3940_v27  ;;  %2454 = vmatprep.subr.bf16.mxu1 %v3941_v28  ;;  %v4020_v21 = vld [vmem:[%s6050_s1 + $0x630] ss:$8 sps:$4 sm:$0xff]   ;;  %v4025_v22 = vld [vmem:[%s6050_s1 + $0x144] ss:$8 sps:$4 sm:$0xff]   ;;  %v4023_v24 = vld [vmem:[%s6050_s1 + $0x140] ss:$8 sps:$4 sm:$0xff]  }
  0x1d   :  { %2659 = vmatprep.subr.bf16.mxu0 %v3943_v29  ;;  %v4028_v23 = vld [vmem:[%s6050_s1 + $0x644] ss:$8 sps:$4 sm:$0xff]   ;;  %v4026_v25 = vld [vmem:[%s6050_s1 + $0x640] ss:$8 sps:$4 sm:$0xff]   ;;  %v4031_v26 = vld [vmem:[%s6050_s1 + $0x154] ss:$8 sps:$4 sm:$0xff]  }
  0x1e   :  { %v4034_v27 = vld [vmem:[%s6050_s1 + $0x654] ss:$8 sps:$4 sm:$0xff]   ;;  %v4029_v28 = vld [vmem:[%s6050_s1 + $0x150] ss:$8 sps:$4 sm:$0xff]   ;;  %v4061_v50 = vld [vmem:[%s6050_s1 + $0x1a4] ss:$8 sps:$4 sm:$0xff]  }
  0x1f   :  { %2455 = vmatpush1.bf16.msra.mxu1 %v3945_v30  ;;  %v4032_v29 = vld [vmem:[%s6050_s1 + $0x650] ss:$8 sps:$4 sm:$0xff]   ;;  %v4037_v30 = vld [vmem:[%s6050_s1 + $0x164] ss:$8 sps:$4 sm:$0xff]   ;;  %v4055_v46 = vld [vmem:[%s6050_s1 + $0x194] ss:$8 sps:$4 sm:$0xff]  }
  0x20   :  { %2660 = vmatpush1.bf16.msra.mxu0 %v3946_v31  ;;  %2456 = vmatprep.subr.bf16.mxu1 %v3947_v32  ;;  %v4040_v31 = vld [vmem:[%s6050_s1 + $0x664] ss:$8 sps:$4 sm:$0xff]   ;;  %v4053_v48 = vld [vmem:[%s6050_s1 + $0x190] ss:$8 sps:$4 sm:$0xff]   ;;  %v4062_v53 = vld [vmem:[%s6050_s1 + $0x6a0] ss:$8 sps:$4 sm:$0xff]  }
  0x21   :  { %2661 = vmatprep.subr.bf16.mxu0 %v3949_v33  ;;  %v4915_v32 = vld [vmem:[%s6049_s0 + $0x8] sm:$0xff] }
  0x22   :  { %v4035_v33 = vld [vmem:[%s6050_s1 + $0x160] ss:$8 sps:$4 sm:$0xff]  }
  0x23   :  { %2457 = vmatpush1.bf16.msra.mxu1 %v3951_v34  ;;  %v4038_v34 = vld [vmem:[%s6050_s1 + $0x660] ss:$8 sps:$4 sm:$0xff]  }
  0x24   :  { %2662 = vmatpush1.bf16.msra.mxu0 %v3952_v35  ;;  %2458 = vmatprep.subr.bf16.mxu1 %v3953_v36  ;;  %v3378_v35 = vcombine.high %v4915_v32, %v4915_v32  ;;  %v4928_v36 = vld [vmem:[%s6049_s0 + $0x30] sm:$0xff] }
  0x25   :  { %2663 = vmatprep.subr.bf16.mxu0 %v3955_v37  ;;  %v4043_v37 = vld [vmem:[%s6050_s1 + $0x174] ss:$8 sps:$4 sm:$0xff]  }
  0x27   :  { %2459 = vmatpush1.bf16.msra.mxu1 %v3957_v38  ;;  %v3388_v38 = vcombine.high %v4928_v36, %v4928_v36 }
  0x28   :  { %2664 = vmatpush1.bf16.msra.mxu0 %v3958_v39  ;;  %2460 = vmatprep.subr.bf16.mxu1 %v3959_v40  ;;  %v4046_v39 = vld [vmem:[%s6050_s1 + $0x674] ss:$8 sps:$4 sm:$0xff]   ;;  %v4041_v40 = vld [vmem:[%s6050_s1 + $0x170] ss:$8 sps:$4 sm:$0xff]  }
  0x29   :  { %2665 = vmatprep.subr.bf16.mxu0 %v3961_v41  ;;  %v4044_v41 = vld [vmem:[%s6050_s1 + $0x670] ss:$8 sps:$4 sm:$0xff]  }
  0x2b   :  { %2461 = vmatpush1.bf16.msra.mxu1 %v3963_v42  ;;  %v4049_v42 = vld [vmem:[%s6050_s1 + $0x184] ss:$8 sps:$4 sm:$0xff]  }
  0x2c   :  { %2666 = vmatpush1.bf16.msra.mxu0 %v3964_v43  ;;  %2462 = vmatprep.subr.bf16.mxu1 %v3965_v44  ;;  %v4052_v43 = vld [vmem:[%s6050_s1 + $0x684] ss:$8 sps:$4 sm:$0xff]   ;;  %v4047_v44 = vld [vmem:[%s6050_s1 + $0x180] ss:$8 sps:$4 sm:$0xff]  }
  0x2d   :  { %2667 = vmatprep.subr.bf16.mxu0 %v3967_v45  ;;  %v4050_v45 = vld [vmem:[%s6050_s1 + $0x680] ss:$8 sps:$4 sm:$0xff]  }
  0x2f   :  { %2463 = vmatpush1.bf16.msra.mxu1 %v3969_v47  ;;  %v4058_v47 = vld [vmem:[%s6050_s1 + $0x694] ss:$8 sps:$4 sm:$0xff]  }
  0x30   :  { %2668 = vmatpush1.bf16.msra.mxu0 %v3970_v49  ;;  %2464 = vmatprep.subr.bf16.mxu1 %v3971_v51  ;;  %v4056_v49 = vld [vmem:[%s6050_s1 + $0x690] ss:$8 sps:$4 sm:$0xff]   ;;  %v4064_v51 = vld [vmem:[%s6050_s1 + $0x6a4] ss:$8 sps:$4 sm:$0xff]  }
  0x31   :  { %2669 = vmatprep.subr.bf16.mxu0 %v3973_v52  ;;  %v4059_v52 = vld [vmem:[%s6050_s1 + $0x1a0] ss:$8 sps:$4 sm:$0xff]  }
  0x33   :  { %2465 = vmatpush1.bf16.msra.mxu1 %v3975_v54  ;;  %v4067_v54 = vld [vmem:[%s6050_s1 + $0x1b4] ss:$8 sps:$4 sm:$0xff]  }
  0x34   :  { %2670 = vmatpush1.bf16.msra.mxu0 %v3976_v55  ;;  %2466 = vmatprep.subr.bf16.mxu1 %v3977_v56  ;;  %v4070_v55 = vld [vmem:[%s6050_s1 + $0x6b4] ss:$8 sps:$4 sm:$0xff]   ;;  %v4065_v56 = vld [vmem:[%s6050_s1 + $0x1b0] ss:$8 sps:$4 sm:$0xff]  }
  0x35   :  { %2671 = vmatprep.subr.bf16.mxu0 %v3979_v57  ;;  %v4068_v57 = vld [vmem:[%s6050_s1 + $0x6b0] ss:$8 sps:$4 sm:$0xff]  }
  0x37   :  { %2467 = vmatpush1.bf16.msra.mxu1 %v3981_v58  ;;  %v4073_v58 = vld [vmem:[%s6050_s1 + $0x1c4] ss:$8 sps:$4 sm:$0xff]  }
  0x38   :  { %2672 = vmatpush1.bf16.msra.mxu0 %v3982_v59  ;;  %2468 = vmatprep.subr.bf16.mxu1 %v3983_v60  ;;  %v4076_v59 = vld [vmem:[%s6050_s1 + $0x6c4] ss:$8 sps:$4 sm:$0xff]   ;;  %v4071_v60 = vld [vmem:[%s6050_s1 + $0x1c0] ss:$8 sps:$4 sm:$0xff]  }
  0x39   :  { %2673 = vmatprep.subr.bf16.mxu0 %v3985_v61  ;;  %v4074_v61 = vld [vmem:[%s6050_s1 + $0x6c0] ss:$8 sps:$4 sm:$0xff]  }
  0x3b   :  { %2469 = vmatpush1.bf16.msra.mxu1 %v3987_v62  ;;  %v4079_v62 = vld [vmem:[%s6050_s1 + $0x1d4] ss:$8 sps:$4 sm:$0xff]  }
  0x3c   :  { %2674 = vmatpush1.bf16.msra.mxu0 %v3988_v63  ;;  %2470 = vmatprep.subr.bf16.mxu1 %v3989_v0  ;;  %v4082_v63 = vld [vmem:[%s6050_s1 + $0x6d4] ss:$8 sps:$4 sm:$0xff]   ;;  %v4077_v0 = vld [vmem:[%s6050_s1 + $0x1d0] ss:$8 sps:$4 sm:$0xff]  }
  0x3d   :  { %2675 = vmatprep.subr.bf16.mxu0 %v3991_v1  ;;  %v4080_v1 = vld [vmem:[%s6050_s1 + $0x6d0] ss:$8 sps:$4 sm:$0xff]  }
  0x3f   :  { %2471 = vmatpush1.bf16.msra.mxu1 %v3993_v2  ;;  %v4085_v2 = vld [vmem:[%s6050_s1 + $0x1e4] ss:$8 sps:$4 sm:$0xff]  }
  0x40   :  { %2676 = vmatpush1.bf16.msra.mxu0 %v3994_v3  ;;  %2481 = vmatprep.subr.bf16.mxu1 %v3999_v4  ;;  %v4088_v3 = vld [vmem:[%s6050_s1 + $0x6e4] ss:$8 sps:$4 sm:$0xff]   ;;  %v4083_v4 = vld [vmem:[%s6050_s1 + $0x1e0] ss:$8 sps:$4 sm:$0xff]  }
  0x41   :  { %2686 = vmatprep.subr.bf16.mxu0 %v4004_v5  ;;  %v4086_v5 = vld [vmem:[%s6050_s1 + $0x6e0] ss:$8 sps:$4 sm:$0xff]  }
  0x42   :  { %2473 = vmatmul.mubr.bf16.vlgmr.msra.gmra.mrb[0].mxu1 %v3375_v6  ;;  %v4091_v6 = vld [vmem:[%s6050_s1 + $0x1f4] ss:$8 sps:$4 sm:$0xff]  }
  0x43   :  { %2678 = vmatmul.mubr.bf16.vlgmr.msra.gmra.mrb[0].mxu0 %v3385_v7  ;;  %2482 = vmatpush1.bf16.msra.mxu1 %v3997_v8  ;;  %v4094_v7 = vld [vmem:[%s6050_s1 + $0x6f4] ss:$8 sps:$4 sm:$0xff]   ;;  %v4089_v8 = vld [vmem:[%s6050_s1 + $0x1f0] ss:$8 sps:$4 sm:$0xff]  }
  0x44   :  { %2687 = vmatpush1.bf16.msra.mxu0 %v4002_v9  ;;  %2483 = vmatprep.subr.bf16.mxu1 %v4007_v10  ;;  %v4092_v9 = vld [vmem:[%s6050_s1 + $0x6f0] ss:$8 sps:$4 sm:$0xff]   ;;  %v4099_v10 = vld [vmem:[%s6050_s1 + $0x204] ss:$8 sps:$4 sm:$0xff]  }
  0x45   :  { %2688 = vmatprep.subr.bf16.mxu0 %v4010_v11  ;;  %2513 = vmatprep.mubr.bf16.mxu1 %v3378_v35  ;;  %v4104_v11 = vld [vmem:[%s6050_s1 + $0x704] ss:$8 sps:$4 sm:$0xff]   ;;  %v4126_v35 = vld [vmem:[%s6050_s1 + $0x740] ss:$8 sps:$4 sm:$0xff]  }
  0x46   :  { %2718 = vmatprep.mubr.bf16.mxu0 %v3388_v38  ;;  %v4129_v38 = vld [vmem:[%s6050_s1 + $0x250] ss:$8 sps:$4 sm:$0xff]  }
  0x47   :  { %2484 = vmatpush1.bf16.msra.mxu1 %v4005_v12  ;;  %v3377_v12 = vcombine.low %v4915_v32, %v4915_v32  ;;  %v4125_v32 = vld [vmem:[%s6050_s1 + $0x244] ss:$8 sps:$4 sm:$0xff]  }
  0x48   :  { %2689 = vmatpush1.bf16.msra.mxu0 %v4008_v13  ;;  %2485 = vmatprep.subr.bf16.mxu1 %v4013_v14  ;;  %v4097_v13 = vld [vmem:[%s6050_s1 + $0x200] ss:$8 sps:$4 sm:$0xff]   ;;  %v3387_v14 = vcombine.low %v4928_v36, %v4928_v36  ;;  %v4131_v36 = vld [vmem:[%s6050_s1 + $0x254] ss:$8 sps:$4 sm:$0xff]  }
  0x49   :  { %2690 = vmatprep.subr.bf16.mxu0 %v4016_v15  ;;  %v4102_v15 = vld [vmem:[%s6050_s1 + $0x700] ss:$8 sps:$4 sm:$0xff]  }
  0x4b   :  { %2486 = vmatpush1.bf16.msra.mxu1 %v4011_v16  ;;  %v4107_v16 = vld [vmem:[%s6050_s1 + $0x214] ss:$8 sps:$4 sm:$0xff]  }
  0x4c   :  { %2691 = vmatpush1.bf16.msra.mxu0 %v4014_v17  ;;  %2487 = vmatprep.subr.bf16.mxu1 %v4019_v18  ;;  %v4110_v17 = vld [vmem:[%s6050_s1 + $0x714] ss:$8 sps:$4 sm:$0xff]  }
  0x4d   :  { %2692 = vmatprep.subr.bf16.mxu0 %v4022_v19  ;;  %v5065_v18 = vld [vmem:[%s6049_s0 + $0x10] sm:$0xff] }
  0x4e   :  { %v3380_v19 = vcombine.high %v5065_v18, %v5065_v18 }
  0x4f   :  { %2488 = vmatpush1.bf16.msra.mxu1 %v4017_v20  ;;  %v5072_v20 = vld [vmem:[%s6049_s0 + $0x38] sm:$0xff] }
  0x50   :  { %2693 = vmatpush1.bf16.msra.mxu0 %v4020_v21  ;;  %2489 = vmatprep.subr.bf16.mxu1 %v4025_v22  ;;  %v4105_v21 = vld [vmem:[%s6050_s1 + $0x210] ss:$8 sps:$4 sm:$0xff]  }
  0x51   :  { %2694 = vmatprep.subr.bf16.mxu0 %v4028_v23  ;;  %v4108_v22 = vld [vmem:[%s6050_s1 + $0x710] ss:$8 sps:$4 sm:$0xff]   ;;  %v3390_v23 = vcombine.high %v5072_v20, %v5072_v20 }
  0x53   :  { %2490 = vmatpush1.bf16.msra.mxu1 %v4023_v24  ;;  %v4113_v24 = vld [vmem:[%s6050_s1 + $0x224] ss:$8 sps:$4 sm:$0xff]  }
  0x54   :  { %2695 = vmatpush1.bf16.msra.mxu0 %v4026_v25  ;;  %2491 = vmatprep.subr.bf16.mxu1 %v4031_v26  ;;  %v4116_v25 = vld [vmem:[%s6050_s1 + $0x724] ss:$8 sps:$4 sm:$0xff]   ;;  %v4111_v26 = vld [vmem:[%s6050_s1 + $0x220] ss:$8 sps:$4 sm:$0xff]  }
  0x55   :  { %2696 = vmatprep.subr.bf16.mxu0 %v4034_v27  ;;  %v4114_v27 = vld [vmem:[%s6050_s1 + $0x720] ss:$8 sps:$4 sm:$0xff]  }
  0x57   :  { %2492 = vmatpush1.bf16.msra.mxu1 %v4029_v28  ;;  %v4119_v28 = vld [vmem:[%s6050_s1 + $0x234] ss:$8 sps:$4 sm:$0xff]  }
  0x58   :  { %2697 = vmatpush1.bf16.msra.mxu0 %v4032_v29  ;;  %2493 = vmatprep.subr.bf16.mxu1 %v4037_v30  ;;  %v4122_v29 = vld [vmem:[%s6050_s1 + $0x734] ss:$8 sps:$4 sm:$0xff]   ;;  %v4117_v30 = vld [vmem:[%s6050_s1 + $0x230] ss:$8 sps:$4 sm:$0xff]  }
  0x59   :  { %2698 = vmatprep.subr.bf16.mxu0 %v4040_v31  ;;  %v4120_v31 = vld [vmem:[%s6050_s1 + $0x730] ss:$8 sps:$4 sm:$0xff]  }
  0x5b   :  { %2494 = vmatpush1.bf16.msra.mxu1 %v4035_v33  ;;  %v4128_v33 = vld [vmem:[%s6050_s1 + $0x744] ss:$8 sps:$4 sm:$0xff]  }
  0x5c   :  { %2699 = vmatpush1.bf16.msra.mxu0 %v4038_v34  ;;  %2495 = vmatprep.subr.bf16.mxu1 %v4043_v37  ;;  %v4123_v34 = vld [vmem:[%s6050_s1 + $0x240] ss:$8 sps:$4 sm:$0xff]   ;;  %v4134_v37 = vld [vmem:[%s6050_s1 + $0x754] ss:$8 sps:$4 sm:$0xff]  }
  0x5d   :  { %2700 = vmatprep.subr.bf16.mxu0 %v4046_v39  ;;  %v4132_v39 = vld [vmem:[%s6050_s1 + $0x750] ss:$8 sps:$4 sm:$0xff]  }
  0x5f   :  { %2496 = vmatpush1.bf16.msra.mxu1 %v4041_v40  ;;  %v4137_v40 = vld [vmem:[%s6050_s1 + $0x264] ss:$8 sps:$4 sm:$0xff]  }
  0x60   :  { %2701 = vmatpush1.bf16.msra.mxu0 %v4044_v41  ;;  %2497 = vmatprep.subr.bf16.mxu1 %v4049_v42  ;;  %v4140_v41 = vld [vmem:[%s6050_s1 + $0x764] ss:$8 sps:$4 sm:$0xff]   ;;  %v4135_v42 = vld [vmem:[%s6050_s1 + $0x260] ss:$8 sps:$4 sm:$0xff]  }
  0x61   :  { %2702 = vmatprep.subr.bf16.mxu0 %v4052_v43  ;;  %v4138_v43 = vld [vmem:[%s6050_s1 + $0x760] ss:$8 sps:$4 sm:$0xff]  }
  0x63   :  { %2498 = vmatpush1.bf16.msra.mxu1 %v4047_v44  ;;  %v4143_v44 = vld [vmem:[%s6050_s1 + $0x274] ss:$8 sps:$4 sm:$0xff]  }
  0x64   :  { %2703 = vmatpush1.bf16.msra.mxu0 %v4050_v45  ;;  %2499 = vmatprep.subr.bf16.mxu1 %v4055_v46  ;;  %v4146_v45 = vld [vmem:[%s6050_s1 + $0x774] ss:$8 sps:$4 sm:$0xff]   ;;  %v4141_v46 = vld [vmem:[%s6050_s1 + $0x270] ss:$8 sps:$4 sm:$0xff]  }
  0x65   :  { %2704 = vmatprep.subr.bf16.mxu0 %v4058_v47  ;;  %v4144_v47 = vld [vmem:[%s6050_s1 + $0x770] ss:$8 sps:$4 sm:$0xff]  }
  0x67   :  { %2500 = vmatpush1.bf16.msra.mxu1 %v4053_v48  ;;  %v4149_v48 = vld [vmem:[%s6050_s1 + $0x284] ss:$8 sps:$4 sm:$0xff]  }
  0x68   :  { %2705 = vmatpush1.bf16.msra.mxu0 %v4056_v49  ;;  %2501 = vmatprep.subr.bf16.mxu1 %v4061_v50  ;;  %v4152_v49 = vld [vmem:[%s6050_s1 + $0x784] ss:$8 sps:$4 sm:$0xff]   ;;  %v4147_v50 = vld [vmem:[%s6050_s1 + $0x280] ss:$8 sps:$4 sm:$0xff]  }
  0x69   :  { %2706 = vmatprep.subr.bf16.mxu0 %v4064_v51  ;;  %v4150_v51 = vld [vmem:[%s6050_s1 + $0x780] ss:$8 sps:$4 sm:$0xff]  }
  0x6b   :  { %2502 = vmatpush1.bf16.msra.mxu1 %v4059_v52  ;;  %v4155_v52 = vld [vmem:[%s6050_s1 + $0x294] ss:$8 sps:$4 sm:$0xff]  }
  0x6c   :  { %2707 = vmatpush1.bf16.msra.mxu0 %v4062_v53  ;;  %2503 = vmatprep.subr.bf16.mxu1 %v4067_v54  ;;  %v4158_v53 = vld [vmem:[%s6050_s1 + $0x794] ss:$8 sps:$4 sm:$0xff]   ;;  %v4153_v54 = vld [vmem:[%s6050_s1 + $0x290] ss:$8 sps:$4 sm:$0xff]  }
  0x6d   :  { %2708 = vmatprep.subr.bf16.mxu0 %v4070_v55  ;;  %v4156_v55 = vld [vmem:[%s6050_s1 + $0x790] ss:$8 sps:$4 sm:$0xff]  }
  0x6f   :  { %2504 = vmatpush1.bf16.msra.mxu1 %v4065_v56  ;;  %v4161_v56 = vld [vmem:[%s6050_s1 + $0x2a4] ss:$8 sps:$4 sm:$0xff]  }
  0x70   :  { %2709 = vmatpush1.bf16.msra.mxu0 %v4068_v57  ;;  %2505 = vmatprep.subr.bf16.mxu1 %v4073_v58  ;;  %v4164_v57 = vld [vmem:[%s6050_s1 + $0x7a4] ss:$8 sps:$4 sm:$0xff]   ;;  %v4159_v58 = vld [vmem:[%s6050_s1 + $0x2a0] ss:$8 sps:$4 sm:$0xff]  }
  0x71   :  { %2710 = vmatprep.subr.bf16.mxu0 %v4076_v59  ;;  %v4162_v59 = vld [vmem:[%s6050_s1 + $0x7a0] ss:$8 sps:$4 sm:$0xff]  }
  0x73   :  { %2506 = vmatpush1.bf16.msra.mxu1 %v4071_v60  ;;  %v4167_v60 = vld [vmem:[%s6050_s1 + $0x2b4] ss:$8 sps:$4 sm:$0xff]  }
  0x74   :  { %2711 = vmatpush1.bf16.msra.mxu0 %v4074_v61  ;;  %2507 = vmatprep.subr.bf16.mxu1 %v4079_v62  ;;  %v4170_v61 = vld [vmem:[%s6050_s1 + $0x7b4] ss:$8 sps:$4 sm:$0xff]   ;;  %v4165_v62 = vld [vmem:[%s6050_s1 + $0x2b0] ss:$8 sps:$4 sm:$0xff]  }
  0x75   :  { %2712 = vmatprep.subr.bf16.mxu0 %v4082_v63  ;;  %v4168_v63 = vld [vmem:[%s6050_s1 + $0x7b0] ss:$8 sps:$4 sm:$0xff]  }
  0x77   :  { %2508 = vmatpush1.bf16.msra.mxu1 %v4077_v0  ;;  %v4173_v0 = vld [vmem:[%s6050_s1 + $0x2c4] ss:$8 sps:$4 sm:$0xff]  }
  0x78   :  { %2713 = vmatpush1.bf16.msra.mxu0 %v4080_v1  ;;  %2509 = vmatprep.subr.bf16.mxu1 %v4085_v2  ;;  %v4176_v1 = vld [vmem:[%s6050_s1 + $0x7c4] ss:$8 sps:$4 sm:$0xff]   ;;  %v4171_v2 = vld [vmem:[%s6050_s1 + $0x2c0] ss:$8 sps:$4 sm:$0xff]  }
  0x79   :  { %2714 = vmatprep.subr.bf16.mxu0 %v4088_v3  ;;  %v4174_v3 = vld [vmem:[%s6050_s1 + $0x7c0] ss:$8 sps:$4 sm:$0xff]  }
  0x7b   :  { %2510 = vmatpush1.bf16.msra.mxu1 %v4083_v4  ;;  %v4179_v4 = vld [vmem:[%s6050_s1 + $0x2d4] ss:$8 sps:$4 sm:$0xff]  }
  0x7c   :  { %2715 = vmatpush1.bf16.msra.mxu0 %v4086_v5  ;;  %2511 = vmatprep.subr.bf16.mxu1 %v4091_v6  ;;  %v4182_v5 = vld [vmem:[%s6050_s1 + $0x7d4] ss:$8 sps:$4 sm:$0xff]   ;;  %v4177_v6 = vld [vmem:[%s6050_s1 + $0x2d0] ss:$8 sps:$4 sm:$0xff]  }
  0x7d   :  { %2716 = vmatprep.subr.bf16.mxu0 %v4094_v7  ;;  %v4180_v7 = vld [vmem:[%s6050_s1 + $0x7d0] ss:$8 sps:$4 sm:$0xff]  }
  0x7f   :  { %2512 = vmatpush1.bf16.msra.mxu1 %v4089_v8  ;;  %v4185_v8 = vld [vmem:[%s6050_s1 + $0x2e4] ss:$8 sps:$4 sm:$0xff]  }
  0x80   :  { %2717 = vmatpush1.bf16.msra.mxu0 %v4092_v9  ;;  %2522 = vmatprep.subr.bf16.mxu1 %v4099_v10  ;;  %v4188_v9 = vld [vmem:[%s6050_s1 + $0x7e4] ss:$8 sps:$4 sm:$0xff]   ;;  %v4183_v10 = vld [vmem:[%s6050_s1 + $0x2e0] ss:$8 sps:$4 sm:$0xff]  }
  0x81   :  { %2727 = vmatprep.subr.bf16.mxu0 %v4104_v11  ;;  %v4186_v11 = vld [vmem:[%s6050_s1 + $0x7e0] ss:$8 sps:$4 sm:$0xff]  }
  0x82   :  { %2514 = vmatmul.mubr.bf16.vlgmr.msra.gmra.mrb[0].mxu1 %v3377_v12  ;;  %v4191_v12 = vld [vmem:[%s6050_s1 + $0x2f4] ss:$8 sps:$4 sm:$0xff]  }
  0x83   :  { %2719 = vmatmul.mubr.bf16.vlgmr.msra.gmra.mrb[0].mxu0 %v3387_v14  ;;  %2523 = vmatpush1.bf16.msra.mxu1 %v4097_v13  ;;  %v4194_v13 = vld [vmem:[%s6050_s1 + $0x7f4] ss:$8 sps:$4 sm:$0xff]   ;;  %v4189_v14 = vld [vmem:[%s6050_s1 + $0x2f0] ss:$8 sps:$4 sm:$0xff]  }
  0x84   :  { %2728 = vmatpush1.bf16.msra.mxu0 %v4102_v15  ;;  %2524 = vmatprep.subr.bf16.mxu1 %v4107_v16  ;;  %v4192_v15 = vld [vmem:[%s6050_s1 + $0x7f0] ss:$8 sps:$4 sm:$0xff]   ;;  %v4199_v16 = vld [vmem:[%s6050_s1 + $0x304] ss:$8 sps:$4 sm:$0xff]  }
  0x85   :  { %2729 = vmatprep.subr.bf16.mxu0 %v4110_v17  ;;  %2554 = vmatprep.mubr.bf16.mxu1 %v3380_v19  ;;  %v4204_v17 = vld [vmem:[%s6050_s1 + $0x804] ss:$8 sps:$4 sm:$0xff]   ;;  %v4197_v19 = vld [vmem:[%s6050_s1 + $0x300] ss:$8 sps:$4 sm:$0xff]  }
  0x86   :  { %2759 = vmatprep.mubr.bf16.mxu0 %v3390_v23  ;;  %v3389_v23 = vcombine.low %v5072_v20, %v5072_v20 }
  0x87   :  { %2525 = vmatpush1.bf16.msra.mxu1 %v4105_v21  ;;  %v4202_v21 = vld [vmem:[%s6050_s1 + $0x800] ss:$8 sps:$4 sm:$0xff]  }
  0x88   :  { %2730 = vmatpush1.bf16.msra.mxu0 %v4108_v22  ;;  %2526 = vmatprep.subr.bf16.mxu1 %v4113_v24  ;;  %v3379_v22 = vcombine.low %v5065_v18, %v5065_v18  ;;  %v5269_v24 = vld [vmem:[%s6049_s0 + $0x18] sm:$0xff] }
  0x89   :  { %2731 = vmatprep.subr.bf16.mxu0 %v4116_v25  ;;  %v5274_v25 = vld [vmem:[%s6049_s0 + $0x40] sm:$0xff]  ;;  %v4210_v18 = vld [vmem:[%s6050_s1 + $0x814] ss:$8 sps:$4 sm:$0xff]   ;;  %v3382_v20 = vcombine.high %v5269_v24, %v5269_v24 }
  0x8b   :  { %2527 = vmatpush1.bf16.msra.mxu1 %v4111_v26  ;;  %v4207_v26 = vld [vmem:[%s6050_s1 + $0x314] ss:$8 sps:$4 sm:$0xff]  }
  0x8c   :  { %2732 = vmatpush1.bf16.msra.mxu0 %v4114_v27  ;;  %2528 = vmatprep.subr.bf16.mxu1 %v4119_v28  ;;  %v3392_v27 = vcombine.high %v5274_v25, %v5274_v25  ;;  %v4205_v28 = vld [vmem:[%s6050_s1 + $0x310] ss:$8 sps:$4 sm:$0xff]  }
  0x8d   :  { %2733 = vmatprep.subr.bf16.mxu0 %v4122_v29  ;;  %v4208_v29 = vld [vmem:[%s6050_s1 + $0x810] ss:$8 sps:$4 sm:$0xff]  }
  0x8f   :  { %2529 = vmatpush1.bf16.msra.mxu1 %v4117_v30  ;;  %v4213_v30 = vld [vmem:[%s6050_s1 + $0x324] ss:$8 sps:$4 sm:$0xff]  }
  0x90   :  { %2734 = vmatpush1.bf16.msra.mxu0 %v4120_v31  ;;  %2530 = vmatprep.subr.bf16.mxu1 %v4125_v32  ;;  %v4216_v31 = vld [vmem:[%s6050_s1 + $0x824] ss:$8 sps:$4 sm:$0xff]   ;;  %v4211_v32 = vld [vmem:[%s6050_s1 + $0x320] ss:$8 sps:$4 sm:$0xff]  }
  0x91   :  { %2735 = vmatprep.subr.bf16.mxu0 %v4128_v33  ;;  %v4214_v33 = vld [vmem:[%s6050_s1 + $0x820] ss:$8 sps:$4 sm:$0xff]  }
  0x93   :  { %2531 = vmatpush1.bf16.msra.mxu1 %v4123_v34  ;;  %v4219_v34 = vld [vmem:[%s6050_s1 + $0x334] ss:$8 sps:$4 sm:$0xff]  }
  0x94   :  { %2736 = vmatpush1.bf16.msra.mxu0 %v4126_v35  ;;  %2532 = vmatprep.subr.bf16.mxu1 %v4131_v36  ;;  %v4222_v35 = vld [vmem:[%s6050_s1 + $0x834] ss:$8 sps:$4 sm:$0xff]   ;;  %v4217_v36 = vld [vmem:[%s6050_s1 + $0x330] ss:$8 sps:$4 sm:$0xff]  }
  0x95   :  { %2737 = vmatprep.subr.bf16.mxu0 %v4134_v37  ;;  %v4220_v37 = vld [vmem:[%s6050_s1 + $0x830] ss:$8 sps:$4 sm:$0xff]  }
  0x97   :  { %2533 = vmatpush1.bf16.msra.mxu1 %v4129_v38  ;;  %v4225_v38 = vld [vmem:[%s6050_s1 + $0x344] ss:$8 sps:$4 sm:$0xff]  }
  0x98   :  { %2738 = vmatpush1.bf16.msra.mxu0 %v4132_v39  ;;  %2534 = vmatprep.subr.bf16.mxu1 %v4137_v40  ;;  %v4228_v39 = vld [vmem:[%s6050_s1 + $0x844] ss:$8 sps:$4 sm:$0xff]   ;;  %v4223_v40 = vld [vmem:[%s6050_s1 + $0x340] ss:$8 sps:$4 sm:$0xff]  }
  0x99   :  { %2739 = vmatprep.subr.bf16.mxu0 %v4140_v41  ;;  %v4226_v41 = vld [vmem:[%s6050_s1 + $0x840] ss:$8 sps:$4 sm:$0xff]  }
  0x9b   :  { %2535 = vmatpush1.bf16.msra.mxu1 %v4135_v42  ;;  %v4231_v42 = vld [vmem:[%s6050_s1 + $0x354] ss:$8 sps:$4 sm:$0xff]  }
  0x9c   :  { %2740 = vmatpush1.bf16.msra.mxu0 %v4138_v43  ;;  %2536 = vmatprep.subr.bf16.mxu1 %v4143_v44  ;;  %v4234_v43 = vld [vmem:[%s6050_s1 + $0x854] ss:$8 sps:$4 sm:$0xff]   ;;  %v4229_v44 = vld [vmem:[%s6050_s1 + $0x350] ss:$8 sps:$4 sm:$0xff]  }
  0x9d   :  { %2741 = vmatprep.subr.bf16.mxu0 %v4146_v45  ;;  %v4232_v45 = vld [vmem:[%s6050_s1 + $0x850] ss:$8 sps:$4 sm:$0xff]  }
  0x9f   :  { %2537 = vmatpush1.bf16.msra.mxu1 %v4141_v46  ;;  %v4237_v46 = vld [vmem:[%s6050_s1 + $0x364] ss:$8 sps:$4 sm:$0xff]  }
  0xa0   :  { %2742 = vmatpush1.bf16.msra.mxu0 %v4144_v47  ;;  %2538 = vmatprep.subr.bf16.mxu1 %v4149_v48  ;;  %v4240_v47 = vld [vmem:[%s6050_s1 + $0x864] ss:$8 sps:$4 sm:$0xff]   ;;  %v4235_v48 = vld [vmem:[%s6050_s1 + $0x360] ss:$8 sps:$4 sm:$0xff]  }
  0xa1   :  { %2743 = vmatprep.subr.bf16.mxu0 %v4152_v49  ;;  %v4238_v49 = vld [vmem:[%s6050_s1 + $0x860] ss:$8 sps:$4 sm:$0xff]  }
  0xa3   :  { %2539 = vmatpush1.bf16.msra.mxu1 %v4147_v50  ;;  %v4243_v50 = vld [vmem:[%s6050_s1 + $0x374] ss:$8 sps:$4 sm:$0xff]  }
  0xa4   :  { %2744 = vmatpush1.bf16.msra.mxu0 %v4150_v51  ;;  %2540 = vmatprep.subr.bf16.mxu1 %v4155_v52  ;;  %v4246_v51 = vld [vmem:[%s6050_s1 + $0x874] ss:$8 sps:$4 sm:$0xff]   ;;  %v4241_v52 = vld [vmem:[%s6050_s1 + $0x370] ss:$8 sps:$4 sm:$0xff]  }
  0xa5   :  { %2745 = vmatprep.subr.bf16.mxu0 %v4158_v53  ;;  %v4244_v53 = vld [vmem:[%s6050_s1 + $0x870] ss:$8 sps:$4 sm:$0xff]  }
  0xa7   :  { %2541 = vmatpush1.bf16.msra.mxu1 %v4153_v54  ;;  %v4249_v54 = vld [vmem:[%s6050_s1 + $0x384] ss:$8 sps:$4 sm:$0xff]  }
  0xa8   :  { %2746 = vmatpush1.bf16.msra.mxu0 %v4156_v55  ;;  %2542 = vmatprep.subr.bf16.mxu1 %v4161_v56  ;;  %v4252_v55 = vld [vmem:[%s6050_s1 + $0x884] ss:$8 sps:$4 sm:$0xff]   ;;  %v4247_v56 = vld [vmem:[%s6050_s1 + $0x380] ss:$8 sps:$4 sm:$0xff]  }
  0xa9   :  { %2747 = vmatprep.subr.bf16.mxu0 %v4164_v57  ;;  %v4250_v57 = vld [vmem:[%s6050_s1 + $0x880] ss:$8 sps:$4 sm:$0xff]  }
  0xab   :  { %2543 = vmatpush1.bf16.msra.mxu1 %v4159_v58  ;;  %v4255_v58 = vld [vmem:[%s6050_s1 + $0x394] ss:$8 sps:$4 sm:$0xff]  }
  0xac   :  { %2748 = vmatpush1.bf16.msra.mxu0 %v4162_v59  ;;  %2544 = vmatprep.subr.bf16.mxu1 %v4167_v60  ;;  %v4258_v59 = vld [vmem:[%s6050_s1 + $0x894] ss:$8 sps:$4 sm:$0xff]   ;;  %v4253_v60 = vld [vmem:[%s6050_s1 + $0x390] ss:$8 sps:$4 sm:$0xff]  }
  0xad   :  { %2749 = vmatprep.subr.bf16.mxu0 %v4170_v61  ;;  %v4256_v61 = vld [vmem:[%s6050_s1 + $0x890] ss:$8 sps:$4 sm:$0xff]  }
  0xaf   :  { %2545 = vmatpush1.bf16.msra.mxu1 %v4165_v62  ;;  %v4261_v62 = vld [vmem:[%s6050_s1 + $0x3a4] ss:$8 sps:$4 sm:$0xff]  }
  0xb0   :  { %2750 = vmatpush1.bf16.msra.mxu0 %v4168_v63  ;;  %2546 = vmatprep.subr.bf16.mxu1 %v4173_v0  ;;  %v4264_v63 = vld [vmem:[%s6050_s1 + $0x8a4] ss:$8 sps:$4 sm:$0xff]   ;;  %v4259_v0 = vld [vmem:[%s6050_s1 + $0x3a0] ss:$8 sps:$4 sm:$0xff]  }
  0xb1   :  { %2751 = vmatprep.subr.bf16.mxu0 %v4176_v1  ;;  %v4262_v1 = vld [vmem:[%s6050_s1 + $0x8a0] ss:$8 sps:$4 sm:$0xff]  }
  0xb3   :  { %2547 = vmatpush1.bf16.msra.mxu1 %v4171_v2  ;;  %v4267_v2 = vld [vmem:[%s6050_s1 + $0x3b4] ss:$8 sps:$4 sm:$0xff]  }
  0xb4   :  { %2752 = vmatpush1.bf16.msra.mxu0 %v4174_v3  ;;  %2548 = vmatprep.subr.bf16.mxu1 %v4179_v4  ;;  %v4270_v3 = vld [vmem:[%s6050_s1 + $0x8b4] ss:$8 sps:$4 sm:$0xff]   ;;  %v4265_v4 = vld [vmem:[%s6050_s1 + $0x3b0] ss:$8 sps:$4 sm:$0xff]  }
  0xb5   :  { %2753 = vmatprep.subr.bf16.mxu0 %v4182_v5  ;;  %v4268_v5 = vld [vmem:[%s6050_s1 + $0x8b0] ss:$8 sps:$4 sm:$0xff]  }
  0xb7   :  { %2549 = vmatpush1.bf16.msra.mxu1 %v4177_v6  ;;  %v4273_v6 = vld [vmem:[%s6050_s1 + $0x3c4] ss:$8 sps:$4 sm:$0xff]  }
  0xb8   :  { %2754 = vmatpush1.bf16.msra.mxu0 %v4180_v7  ;;  %2550 = vmatprep.subr.bf16.mxu1 %v4185_v8  ;;  %v4276_v7 = vld [vmem:[%s6050_s1 + $0x8c4] ss:$8 sps:$4 sm:$0xff]   ;;  %v4271_v8 = vld [vmem:[%s6050_s1 + $0x3c0] ss:$8 sps:$4 sm:$0xff]  }
  0xb9   :  { %2755 = vmatprep.subr.bf16.mxu0 %v4188_v9  ;;  %v4274_v9 = vld [vmem:[%s6050_s1 + $0x8c0] ss:$8 sps:$4 sm:$0xff]  }
  0xbb   :  { %2551 = vmatpush1.bf16.msra.mxu1 %v4183_v10  ;;  %v4279_v10 = vld [vmem:[%s6050_s1 + $0x3d4] ss:$8 sps:$4 sm:$0xff]  }
  0xbc   :  { %2756 = vmatpush1.bf16.msra.mxu0 %v4186_v11  ;;  %2552 = vmatprep.subr.bf16.mxu1 %v4191_v12  ;;  %v4282_v11 = vld [vmem:[%s6050_s1 + $0x8d4] ss:$8 sps:$4 sm:$0xff]   ;;  %v4277_v12 = vld [vmem:[%s6050_s1 + $0x3d0] ss:$8 sps:$4 sm:$0xff]  }
  0xbd   :  { %2757 = vmatprep.subr.bf16.mxu0 %v4194_v13  ;;  %v4280_v13 = vld [vmem:[%s6050_s1 + $0x8d0] ss:$8 sps:$4 sm:$0xff]  }
  0xbf   :  { %2553 = vmatpush1.bf16.msra.mxu1 %v4189_v14  ;;  %v4285_v14 = vld [vmem:[%s6050_s1 + $0x3e4] ss:$8 sps:$4 sm:$0xff]  }
  0xc0   :  { %2758 = vmatpush1.bf16.msra.mxu0 %v4192_v15  ;;  %2563 = vmatprep.subr.bf16.mxu1 %v4199_v16  ;;  %v4288_v15 = vld [vmem:[%s6050_s1 + $0x8e4] ss:$8 sps:$4 sm:$0xff]   ;;  %v4283_v16 = vld [vmem:[%s6050_s1 + $0x3e0] ss:$8 sps:$4 sm:$0xff]  }
  0xc1   :  { %2768 = vmatprep.subr.bf16.mxu0 %v4204_v17  ;;  %v4286_v17 = vld [vmem:[%s6050_s1 + $0x8e0] ss:$8 sps:$4 sm:$0xff]  }
  0xc2   :  { %2555 = vmatmul.mubr.bf16.vlgmr.msra.gmra.mrb[0].mxu1 %v3379_v22  ;;  %v4289_v22 = vld [vmem:[%s6050_s1 + $0x3f0] ss:$8 sps:$4 sm:$0xff]  }
  0xc3   :  { %2760 = vmatmul.mubr.bf16.vlgmr.msra.gmra.mrb[0].mxu0 %v3389_v23  ;;  %2564 = vmatpush1.bf16.msra.mxu1 %v4197_v19  ;;  %v4291_v19 = vld [vmem:[%s6050_s1 + $0x3f4] ss:$8 sps:$4 sm:$0xff]   ;;  %v4292_v23 = vld [vmem:[%s6050_s1 + $0x8f0] ss:$8 sps:$4 sm:$0xff]  }
  0xc4   :  { %2769 = vmatpush1.bf16.msra.mxu0 %v4202_v21  ;;  %2565 = vmatprep.subr.bf16.mxu1 %v4207_v26  ;;  %v4294_v21 = vld [vmem:[%s6050_s1 + $0x8f4] ss:$8 sps:$4 sm:$0xff]   ;;  %v4299_v26 = vld [vmem:[%s6050_s1 + $0x404] ss:$8 sps:$4 sm:$0xff]  }
  0xc5   :  { %2770 = vmatprep.subr.bf16.mxu0 %v4210_v18  ;;  %2595 = vmatprep.mubr.bf16.mxu1 %v3382_v20  ;;  %v4304_v18 = vld [vmem:[%s6050_s1 + $0x904] ss:$8 sps:$4 sm:$0xff]  }
  0xc6   :  { %2800 = vmatprep.mubr.bf16.mxu0 %v3392_v27  ;;  %v5469_v20 = vld [vmem:[%s6049_s0 + $0x20] sm:$0xff]  ;;  %v5474_v27 = vld [vmem:[%s6049_s0 + $0x48] sm:$0xff] }
  0xc7   :  { %2566 = vmatpush1.bf16.msra.mxu1 %v4205_v28  ;;  %v4297_v28 = vld [vmem:[%s6050_s1 + $0x400] ss:$8 sps:$4 sm:$0xff]  }
  0xc8   :  { %2771 = vmatpush1.bf16.msra.mxu0 %v4208_v29  ;;  %2567 = vmatprep.subr.bf16.mxu1 %v4213_v30  ;;  %v3381_v29 = vcombine.low %v5269_v24, %v5269_v24  ;;  %v3391_v30 = vcombine.low %v5274_v25, %v5274_v25  ;;  %v4305_v24 = vld [vmem:[%s6050_s1 + $0x410] ss:$8 sps:$4 sm:$0xff]  }
  0xc9   :  { %2772 = vmatprep.subr.bf16.mxu0 %v4216_v31  ;;  %v4302_v31 = vld [vmem:[%s6050_s1 + $0x900] ss:$8 sps:$4 sm:$0xff]   ;;  %v4308_v25 = vld [vmem:[%s6050_s1 + $0x910] ss:$8 sps:$4 sm:$0xff]  }
  0xcb   :  { %2568 = vmatpush1.bf16.msra.mxu1 %v4211_v32  ;;  %v4307_v32 = vld [vmem:[%s6050_s1 + $0x414] ss:$8 sps:$4 sm:$0xff]  }
  0xcc   :  { %2773 = vmatpush1.bf16.msra.mxu0 %v4214_v33  ;;  %2569 = vmatprep.subr.bf16.mxu1 %v4219_v34  ;;  %v4310_v33 = vld [vmem:[%s6050_s1 + $0x914] ss:$8 sps:$4 sm:$0xff]   ;;  %v3384_v34 = vcombine.high %v5469_v20, %v5469_v20 }
  0xcd   :  { %2774 = vmatprep.subr.bf16.mxu0 %v4222_v35  ;;  %v3394_v35 = vcombine.high %v5474_v27, %v5474_v27 }
  0xcf   :  { %2570 = vmatpush1.bf16.msra.mxu1 %v4217_v36  ;;  %v4313_v36 = vld [vmem:[%s6050_s1 + $0x424] ss:$8 sps:$4 sm:$0xff]  }
  0xd0   :  { %2775 = vmatpush1.bf16.msra.mxu0 %v4220_v37  ;;  %2571 = vmatprep.subr.bf16.mxu1 %v4225_v38  ;;  %v4316_v37 = vld [vmem:[%s6050_s1 + $0x924] ss:$8 sps:$4 sm:$0xff]   ;;  %v4311_v38 = vld [vmem:[%s6050_s1 + $0x420] ss:$8 sps:$4 sm:$0xff]  }
  0xd1   :  { %2776 = vmatprep.subr.bf16.mxu0 %v4228_v39  ;;  %v4314_v39 = vld [vmem:[%s6050_s1 + $0x920] ss:$8 sps:$4 sm:$0xff]  }
  0xd3   :  { %2572 = vmatpush1.bf16.msra.mxu1 %v4223_v40  ;;  %v4319_v40 = vld [vmem:[%s6050_s1 + $0x434] ss:$8 sps:$4 sm:$0xff]  }
  0xd4   :  { %2777 = vmatpush1.bf16.msra.mxu0 %v4226_v41  ;;  %2573 = vmatprep.subr.bf16.mxu1 %v4231_v42  ;;  %v4322_v41 = vld [vmem:[%s6050_s1 + $0x934] ss:$8 sps:$4 sm:$0xff]   ;;  %v4317_v42 = vld [vmem:[%s6050_s1 + $0x430] ss:$8 sps:$4 sm:$0xff]  }
  0xd5   :  { %2778 = vmatprep.subr.bf16.mxu0 %v4234_v43  ;;  %v4320_v43 = vld [vmem:[%s6050_s1 + $0x930] ss:$8 sps:$4 sm:$0xff]  }
  0xd7   :  { %2574 = vmatpush1.bf16.msra.mxu1 %v4229_v44  ;;  %v4325_v44 = vld [vmem:[%s6050_s1 + $0x444] ss:$8 sps:$4 sm:$0xff]  }
  0xd8   :  { %2779 = vmatpush1.bf16.msra.mxu0 %v4232_v45  ;;  %2575 = vmatprep.subr.bf16.mxu1 %v4237_v46  ;;  %v4328_v45 = vld [vmem:[%s6050_s1 + $0x944] ss:$8 sps:$4 sm:$0xff]   ;;  %v4323_v46 = vld [vmem:[%s6050_s1 + $0x440] ss:$8 sps:$4 sm:$0xff]  }
  0xd9   :  { %2780 = vmatprep.subr.bf16.mxu0 %v4240_v47  ;;  %v4326_v47 = vld [vmem:[%s6050_s1 + $0x940] ss:$8 sps:$4 sm:$0xff]  }
  0xdb   :  { %2576 = vmatpush1.bf16.msra.mxu1 %v4235_v48  ;;  %v4331_v48 = vld [vmem:[%s6050_s1 + $0x454] ss:$8 sps:$4 sm:$0xff]  }
  0xdc   :  { %2781 = vmatpush1.bf16.msra.mxu0 %v4238_v49  ;;  %2577 = vmatprep.subr.bf16.mxu1 %v4243_v50  ;;  %v4334_v49 = vld [vmem:[%s6050_s1 + $0x954] ss:$8 sps:$4 sm:$0xff]  }
  0xdd   :  { %2782 = vmatprep.subr.bf16.mxu0 %v4246_v51 }
  0xdf   :  { %2578 = vmatpush1.bf16.msra.mxu1 %v4241_v52 }
  0xe0   :  { %2783 = vmatpush1.bf16.msra.mxu0 %v4244_v53  ;;  %2579 = vmatprep.subr.bf16.mxu1 %v4249_v54 }
  0xe1   :  { %2784 = vmatprep.subr.bf16.mxu0 %v4252_v55 }
  0xe3   :  { %2580 = vmatpush1.bf16.msra.mxu1 %v4247_v56 }
  0xe4   :  { %2785 = vmatpush1.bf16.msra.mxu0 %v4250_v57  ;;  %2581 = vmatprep.subr.bf16.mxu1 %v4255_v58 }
  0xe5   :  { %2786 = vmatprep.subr.bf16.mxu0 %v4258_v59 }
  0xe7   :  { %2582 = vmatpush1.bf16.msra.mxu1 %v4253_v60 }
  0xe8   :  { %2787 = vmatpush1.bf16.msra.mxu0 %v4256_v61  ;;  %2583 = vmatprep.subr.bf16.mxu1 %v4261_v62 }
  0xe9   :  { %2788 = vmatprep.subr.bf16.mxu0 %v4264_v63 }
  0xeb   :  { %2584 = vmatpush1.bf16.msra.mxu1 %v4259_v0 }
  0xec   :  { %2789 = vmatpush1.bf16.msra.mxu0 %v4262_v1  ;;  %2585 = vmatprep.subr.bf16.mxu1 %v4267_v2 }
  0xed   :  { %2790 = vmatprep.subr.bf16.mxu0 %v4270_v3 }
  0xef   :  { %2586 = vmatpush1.bf16.msra.mxu1 %v4265_v4 }
  0xf0   :  { %2791 = vmatpush1.bf16.msra.mxu0 %v4268_v5  ;;  %2587 = vmatprep.subr.bf16.mxu1 %v4273_v6 }
  0xf1   :  { %2792 = vmatprep.subr.bf16.mxu0 %v4276_v7 }
  0xf3   :  { %2588 = vmatpush1.bf16.msra.mxu1 %v4271_v8 }
  0xf4   :  { %2793 = vmatpush1.bf16.msra.mxu0 %v4274_v9  ;;  %2589 = vmatprep.subr.bf16.mxu1 %v4279_v10 }
  0xf5   :  { %2794 = vmatprep.subr.bf16.mxu0 %v4282_v11 }
  0xf7   :  { %2590 = vmatpush1.bf16.msra.mxu1 %v4277_v12 }
  0xf8   :  { %2795 = vmatpush1.bf16.msra.mxu0 %v4280_v13  ;;  %2591 = vmatprep.subr.bf16.mxu1 %v4285_v14 }
  0xf9   :  { %2796 = vmatprep.subr.bf16.mxu0 %v4288_v15 }
  0xfb   :  { %2592 = vmatpush1.bf16.msra.mxu1 %v4283_v16 }
  0xfc   :  { %2797 = vmatpush1.bf16.msra.mxu0 %v4286_v17  ;;  %2593 = vmatprep.subr.bf16.mxu1 %v4291_v19 }
  0xfd   :  { %2798 = vmatprep.subr.bf16.mxu0 %v4294_v21 }
  0xff   :  { %2594 = vmatpush1.bf16.msra.mxu1 %v4289_v22 }
 0x100   :  { %2799 = vmatpush1.bf16.msra.mxu0 %v4292_v23  ;;  %2604 = vmatprep.subr.bf16.mxu1 %v4299_v26 }
 0x101   :  { %2809 = vmatprep.subr.bf16.mxu0 %v4304_v18 }
 0x102   :  { %2596 = vmatmul.mubr.bf16.vlgmr.msra.gmra.mrb[0].mxu1 %v3381_v29 }
 0x103   :  { %2801 = vmatmul.mubr.bf16.vlgmr.msra.gmra.mrb[0].mxu0 %v3391_v30  ;;  %2605 = vmatpush1.bf16.msra.mxu1 %v4297_v28 }
 0x104   :  { %2810 = vmatpush1.bf16.msra.mxu0 %v4302_v31  ;;  %2606 = vmatprep.subr.bf16.mxu1 %v4307_v32 }
 0x105   :  { %2811 = vmatprep.subr.bf16.mxu0 %v4310_v33  ;;  %2636 = vmatprep.mubr.bf16.mxu1 %v3384_v34 }
 0x106   :  { %2841 = vmatprep.mubr.bf16.mxu0 %v3394_v35 }
 0x107   :  { %2607 = vmatpush1.bf16.msra.mxu1 %v4305_v24 }
 0x108   :  { %2812 = vmatpush1.bf16.msra.mxu0 %v4308_v25  ;;  %2608 = vmatprep.subr.bf16.mxu1 %v4313_v36 }
 0x109   :  { %2813 = vmatprep.subr.bf16.mxu0 %v4316_v37 }
 0x10b   :  { %2609 = vmatpush1.bf16.msra.mxu1 %v4311_v38 }
 0x10c   :  { %2814 = vmatpush1.bf16.msra.mxu0 %v4314_v39  ;;  %2610 = vmatprep.subr.bf16.mxu1 %v4319_v40 }
 0x10d   :  { %2815 = vmatprep.subr.bf16.mxu0 %v4322_v41 }
 0x10f   :  { %2611 = vmatpush1.bf16.msra.mxu1 %v4317_v42 }
 0x110   :  { %2816 = vmatpush1.bf16.msra.mxu0 %v4320_v43  ;;  %2612 = vmatprep.subr.bf16.mxu1 %v4325_v44 }
 0x111   :  { %2817 = vmatprep.subr.bf16.mxu0 %v4328_v45 }
 0x112   :  { %12 = vsyncpa [#allocation3], 0  ;;  %v4329_v50 = vld [vmem:[%s6050_s1 + $0x450] ss:$8 sps:$4 sm:$0xff]   ;;  %v4337_v52 = vld [vmem:[%s6050_s1 + $0x464] ss:$8 sps:$4 sm:$0xff]   ;;  %v3383_v24 = vcombine.low %v5469_v20, %v5469_v20  ;;  %v3393_v25 = vcombine.low %v5474_v27, %v5474_v27 }
 0x113   :  { %2613 = vmatpush1.bf16.msra.mxu1 %v4323_v46  ;;  %v4332_v51 = vld [vmem:[%s6050_s1 + $0x950] ss:$8 sps:$4 sm:$0xff]   ;;  %v4340_v53 = vld [vmem:[%s6050_s1 + $0x964] ss:$8 sps:$4 sm:$0xff]   ;;  %v4335_v54 = vld [vmem:[%s6050_s1 + $0x460] ss:$8 sps:$4 sm:$0xff]  }
 0x114   :  { %2818 = vmatpush1.bf16.msra.mxu0 %v4326_v47  ;;  %2614 = vmatprep.subr.bf16.mxu1 %v4331_v48  ;;  %v4338_v55 = vld [vmem:[%s6050_s1 + $0x960] ss:$8 sps:$4 sm:$0xff]   ;;  %v4343_v56 = vld [vmem:[%s6050_s1 + $0x474] ss:$8 sps:$4 sm:$0xff]   ;;  %v4341_v58 = vld [vmem:[%s6050_s1 + $0x470] ss:$8 sps:$4 sm:$0xff]  }
 0x115   :  { %2819 = vmatprep.subr.bf16.mxu0 %v4334_v49  ;;  %v4346_v57 = vld [vmem:[%s6050_s1 + $0x974] ss:$8 sps:$4 sm:$0xff]   ;;  %v4344_v59 = vld [vmem:[%s6050_s1 + $0x970] ss:$8 sps:$4 sm:$0xff]   ;;  %v4349_v60 = vld [vmem:[%s6050_s1 + $0x484] ss:$8 sps:$4 sm:$0xff]  }
 0x116   :  { %v4352_v61 = vld [vmem:[%s6050_s1 + $0x984] ss:$8 sps:$4 sm:$0xff]   ;;  %v4347_v62 = vld [vmem:[%s6050_s1 + $0x480] ss:$8 sps:$4 sm:$0xff]   ;;  %v4355_v0 = vld [vmem:[%s6050_s1 + $0x494] ss:$8 sps:$4 sm:$0xff]  }
 0x117   :  { %2615 = vmatpush1.bf16.msra.mxu1 %v4329_v50  ;;  %v4350_v63 = vld [vmem:[%s6050_s1 + $0x980] ss:$8 sps:$4 sm:$0xff]   ;;  %v4358_v1 = vld [vmem:[%s6050_s1 + $0x994] ss:$8 sps:$4 sm:$0xff]   ;;  %v4353_v2 = vld [vmem:[%s6050_s1 + $0x490] ss:$8 sps:$4 sm:$0xff]  }
 0x118   :  { %2820 = vmatpush1.bf16.msra.mxu0 %v4332_v51  ;;  %2616 = vmatprep.subr.bf16.mxu1 %v4337_v52  ;;  %v4356_v3 = vld [vmem:[%s6050_s1 + $0x990] ss:$8 sps:$4 sm:$0xff]   ;;  %v4361_v4 = vld [vmem:[%s6050_s1 + $0x4a4] ss:$8 sps:$4 sm:$0xff]   ;;  %v4359_v6 = vld [vmem:[%s6050_s1 + $0x4a0] ss:$8 sps:$4 sm:$0xff]  }
 0x119   :  { %2821 = vmatprep.subr.bf16.mxu0 %v4340_v53  ;;  %v4364_v5 = vld [vmem:[%s6050_s1 + $0x9a4] ss:$8 sps:$4 sm:$0xff]   ;;  %v4362_v7 = vld [vmem:[%s6050_s1 + $0x9a0] ss:$8 sps:$4 sm:$0xff]   ;;  %v4367_v8 = vld [vmem:[%s6050_s1 + $0x4b4] ss:$8 sps:$4 sm:$0xff]  }
 0x11a   :  { %v4370_v9 = vld [vmem:[%s6050_s1 + $0x9b4] ss:$8 sps:$4 sm:$0xff]   ;;  %v4365_v10 = vld [vmem:[%s6050_s1 + $0x4b0] ss:$8 sps:$4 sm:$0xff]   ;;  %v4373_v12 = vld [vmem:[%s6050_s1 + $0x4c4] ss:$8 sps:$4 sm:$0xff]  }
 0x11b   :  { %2617 = vmatpush1.bf16.msra.mxu1 %v4335_v54  ;;  %v4368_v11 = vld [vmem:[%s6050_s1 + $0x9b0] ss:$8 sps:$4 sm:$0xff]   ;;  %v4376_v13 = vld [vmem:[%s6050_s1 + $0x9c4] ss:$8 sps:$4 sm:$0xff]   ;;  %v4371_v14 = vld [vmem:[%s6050_s1 + $0x4c0] ss:$8 sps:$4 sm:$0xff]  }
 0x11c   :  { %2822 = vmatpush1.bf16.msra.mxu0 %v4338_v55  ;;  %2618 = vmatprep.subr.bf16.mxu1 %v4343_v56  ;;  %v4374_v15 = vld [vmem:[%s6050_s1 + $0x9c0] ss:$8 sps:$4 sm:$0xff]   ;;  %v4379_v16 = vld [vmem:[%s6050_s1 + $0x4d4] ss:$8 sps:$4 sm:$0xff]   ;;  %v4377_v19 = vld [vmem:[%s6050_s1 + $0x4d0] ss:$8 sps:$4 sm:$0xff]  }
 0x11d   :  { %2823 = vmatprep.subr.bf16.mxu0 %v4346_v57  ;;  %v4382_v17 = vld [vmem:[%s6050_s1 + $0x9d4] ss:$8 sps:$4 sm:$0xff]   ;;  %v4380_v21 = vld [vmem:[%s6050_s1 + $0x9d0] ss:$8 sps:$4 sm:$0xff]   ;;  %v4385_v22 = vld [vmem:[%s6050_s1 + $0x4e4] ss:$8 sps:$4 sm:$0xff]  }
 0x11e   :  { %v4388_v23 = vld [vmem:[%s6050_s1 + $0x9e4] ss:$8 sps:$4 sm:$0xff]   ;;  %v4383_v26 = vld [vmem:[%s6050_s1 + $0x4e0] ss:$8 sps:$4 sm:$0xff]   ;;  %v4391_v28 = vld [vmem:[%s6050_s1 + $0x4f4] ss:$8 sps:$4 sm:$0xff]  }
 0x11f   :  { %2619 = vmatpush1.bf16.msra.mxu1 %v4341_v58  ;;  %v4386_v18 = vld [vmem:[%s6050_s1 + $0x9e0] ss:$8 sps:$4 sm:$0xff]   ;;  %v4394_v29 = vld [vmem:[%s6050_s1 + $0x9f4] ss:$8 sps:$4 sm:$0xff]   ;;  %v4389_v30 = vld [vmem:[%s6050_s1 + $0x4f0] ss:$8 sps:$4 sm:$0xff]  }
 0x120   :  { %2824 = vmatpush1.bf16.msra.mxu0 %v4344_v59  ;;  %2620 = vmatprep.subr.bf16.mxu1 %v4349_v60  ;;  %v4392_v31 = vld [vmem:[%s6050_s1 + $0x9f0] ss:$8 sps:$4 sm:$0xff]   ;;  %v4401_v32 = vld [vmem:[%s6050_s1 + $0xa04] ss:$8 sps:$4 sm:$0xff]   ;;  %v4399_v34 = vld [vmem:[%s6050_s1 + $0xa00] ss:$8 sps:$4 sm:$0xff]  }
 0x121   :  { %2825 = vmatprep.subr.bf16.mxu0 %v4352_v61  ;;  %v5676_v33 = vld [vmem:[%s6049_s0 + $0x50] sm:$0xff]  ;;  %v4407_v27 = vld [vmem:[%s6050_s1 + $0xa24] ss:$8 sps:$4 sm:$0xff]   ;;  %v4405_v37 = vld [vmem:[%s6050_s1 + $0xa20] ss:$8 sps:$4 sm:$0xff]   ;;  %s4595_s28 = smov [#allocation2]  }
 0x122   :  { %v3396_v35 = vcombine.high %v5676_v33, %v5676_v33  ;;  %v4404_v36 = vld [vmem:[%s6050_s1 + $0xa14] ss:$8 sps:$4 sm:$0xff]   ;;  %v4402_v20 = vld [vmem:[%s6050_s1 + $0xa10] ss:$8 sps:$4 sm:$0xff]   ;;  %v4413_v40 = vld [vmem:[%s6050_s1 + $0xa44] ss:$8 sps:$4 sm:$0xff]  }
 0x123   :  { %2621 = vmatpush1.bf16.msra.mxu1 %v4347_v62  ;;  %v4410_v38 = vld [vmem:[%s6050_s1 + $0xa34] ss:$8 sps:$4 sm:$0xff]   ;;  %v4408_v39 = vld [vmem:[%s6050_s1 + $0xa30] ss:$8 sps:$4 sm:$0xff]   ;;  %v4411_v41 = vld [vmem:[%s6050_s1 + $0xa40] ss:$8 sps:$4 sm:$0xff]  }
 0x124   :  { %2826 = vmatpush1.bf16.msra.mxu0 %v4350_v63  ;;  %2622 = vmatprep.subr.bf16.mxu1 %v4355_v0  ;;  %v4416_v42 = vld [vmem:[%s6050_s1 + $0xa54] ss:$8 sps:$4 sm:$0xff]   ;;  %v4414_v43 = vld [vmem:[%s6050_s1 + $0xa50] ss:$8 sps:$4 sm:$0xff]   ;;  %v4419_v44 = vld [vmem:[%s6050_s1 + $0xa64] ss:$8 sps:$4 sm:$0xff]  }
 0x125   :  { %2827 = vmatprep.subr.bf16.mxu0 %v4358_v1  ;;  %v4417_v45 = vld [vmem:[%s6050_s1 + $0xa60] ss:$8 sps:$4 sm:$0xff]   ;;  %v4422_v46 = vld [vmem:[%s6050_s1 + $0xa74] ss:$8 sps:$4 sm:$0xff]   ;;  %v4420_v47 = vld [vmem:[%s6050_s1 + $0xa70] ss:$8 sps:$4 sm:$0xff]  }
 0x126   :  { %v4425_v48 = vld [vmem:[%s6050_s1 + $0xa84] ss:$8 sps:$4 sm:$0xff]   ;;  %v4423_v49 = vld [vmem:[%s6050_s1 + $0xa80] ss:$8 sps:$4 sm:$0xff]   ;;  %v4428_v50 = vld [vmem:[%s6050_s1 + $0xa94] ss:$8 sps:$4 sm:$0xff]  }
 0x127   :  { %2623 = vmatpush1.bf16.msra.mxu1 %v4353_v2  ;;  %v4426_v51 = vld [vmem:[%s6050_s1 + $0xa90] ss:$8 sps:$4 sm:$0xff]   ;;  %v4431_v52 = vld [vmem:[%s6050_s1 + $0xaa4] ss:$8 sps:$4 sm:$0xff]   ;;  %v4429_v53 = vld [vmem:[%s6050_s1 + $0xaa0] ss:$8 sps:$4 sm:$0xff]   ;;  %v3395_v2 = vcombine.low %v5676_v33, %v5676_v33 }
 0x128   :  { %2828 = vmatpush1.bf16.msra.mxu0 %v4356_v3  ;;  %2624 = vmatprep.subr.bf16.mxu1 %v4361_v4  ;;  %v4434_v54 = vld [vmem:[%s6050_s1 + $0xab4] ss:$8 sps:$4 sm:$0xff]   ;;  %v4432_v55 = vld [vmem:[%s6050_s1 + $0xab0] ss:$8 sps:$4 sm:$0xff]   ;;  %v4437_v56 = vld [vmem:[%s6050_s1 + $0xac4] ss:$8 sps:$4 sm:$0xff]  }
 0x129   :  { %2829 = vmatprep.subr.bf16.mxu0 %v4364_v5  ;;  %v4435_v57 = vld [vmem:[%s6050_s1 + $0xac0] ss:$8 sps:$4 sm:$0xff]   ;;  %v4440_v58 = vld [vmem:[%s6050_s1 + $0xad4] ss:$8 sps:$4 sm:$0xff]   ;;  %v4438_v59 = vld [vmem:[%s6050_s1 + $0xad0] ss:$8 sps:$4 sm:$0xff]  }
 0x12a   :  { %v4443_v60 = vld [vmem:[%s6050_s1 + $0xae4] ss:$8 sps:$4 sm:$0xff]   ;;  %v4441_v61 = vld [vmem:[%s6050_s1 + $0xae0] ss:$8 sps:$4 sm:$0xff]   ;;  %v4446_v62 = vld [vmem:[%s6050_s1 + $0xaf4] ss:$8 sps:$4 sm:$0xff]  }
 0x12b   :  { %2625 = vmatpush1.bf16.msra.mxu1 %v4359_v6  ;;  %v4444_v63 = vld [vmem:[%s6050_s1 + $0xaf0] ss:$8 sps:$4 sm:$0xff]   ;;  %v4451_v0 = vld [vmem:[%s6050_s1 + $0xb04] ss:$8 sps:$4 sm:$0xff]   ;;  %v4449_v3 = vld [vmem:[%s6050_s1 + $0xb00] ss:$8 sps:$4 sm:$0xff]  }
 0x12c   :  { %2830 = vmatpush1.bf16.msra.mxu0 %v4362_v7  ;;  %2626 = vmatprep.subr.bf16.mxu1 %v4367_v8  ;;  %v5783_v1 = vld [vmem:[%s6049_s0 + $0x58] sm:$0xff]  ;;  %v4457_v7 = vld [vmem:[%s6050_s1 + $0xb24] ss:$8 sps:$4 sm:$0xff]   ;;  %v4455_v8 = vld [vmem:[%s6050_s1 + $0xb20] ss:$8 sps:$4 sm:$0xff]   ;;  %s3367_s29 = sshll.u32 %s4595_s28, 4  ;;  %s3368_s29 = int_to_ptr.vmem [resolvable:$true] %s3367_s29 }
 0x12d   :  { %2831 = vmatprep.subr.bf16.mxu0 %v4370_v9  ;;  %v3398_v4 = vcombine.high %v5783_v1, %v5783_v1  ;;  %v4454_v5 = vld [vmem:[%s6050_s1 + $0xb14] ss:$8 sps:$4 sm:$0xff]   ;;  %v4452_v6 = vld [vmem:[%s6050_s1 + $0xb10] ss:$8 sps:$4 sm:$0xff]   ;;  %s4571_s30 = scalar_lea.vmem %s3368_s29, 128  ;;  %p4576_p1 = scmp.lt.s32.totalorder %s3368_s29, %s3368_s29 }
 0x12e   :  { %v4460_v9 = vld [vmem:[%s6050_s1 + $0xb34] ss:$8 sps:$4 sm:$0xff]   ;;  %v4476_v33 = vld [vmem:[%s6050_s1 + $0xb90] ss:$8 sps:$4 sm:$0xff]   ;;  %p4572_p0 = scmp.ne.s32.totalorder %s3368_s29, %s4571_s30  ;;  %p4577_p2 = scmp.lt.s32.totalorder %s4571_s30, %s4571_s30 }
 0x12f   :  { %2627 = vmatpush1.bf16.msra.mxu1 %v4365_v10  ;;  %v4458_v10 = vld [vmem:[%s6050_s1 + $0xb30] ss:$8 sps:$4 sm:$0xff]  }
 0x130   :  { %2832 = vmatpush1.bf16.msra.mxu0 %v4368_v11  ;;  %2628 = vmatprep.subr.bf16.mxu1 %v4373_v12  ;;  %v4463_v11 = vld [vmem:[%s6050_s1 + $0xb44] ss:$8 sps:$4 sm:$0xff]   ;;  %v4461_v12 = vld [vmem:[%s6050_s1 + $0xb40] ss:$8 sps:$4 sm:$0xff]   ;;  %p4578_p3 = por %p4577_p2, %p4576_p1 }
 0x131   :  { %2833 = vmatprep.subr.bf16.mxu0 %v4376_v13  ;;  %v4466_v13 = vld [vmem:[%s6050_s1 + $0xb54] ss:$8 sps:$4 sm:$0xff]  }
 0x132   :  { %p4579_p4 = pnand %p4578_p3, %p4572_p0 }
 0x133   :  { %2629 = vmatpush1.bf16.msra.mxu1 %v4371_v14  ;;  %v4464_v14 = vld [vmem:[%s6050_s1 + $0xb50] ss:$8 sps:$4 sm:$0xff]  }
 0x134   :  { %2834 = vmatpush1.bf16.msra.mxu0 %v4374_v15  ;;  %2630 = vmatprep.subr.bf16.mxu1 %v4379_v16  ;;  %v4469_v15 = vld [vmem:[%s6050_s1 + $0xb64] ss:$8 sps:$4 sm:$0xff]   ;;  %v4467_v16 = vld [vmem:[%s6050_s1 + $0xb60] ss:$8 sps:$4 sm:$0xff]  }
 0x135   :  { %2835 = vmatprep.subr.bf16.mxu0 %v4382_v17  ;;  %v4472_v17 = vld [vmem:[%s6050_s1 + $0xb74] ss:$8 sps:$4 sm:$0xff]  }
 0x137   :  { %2631 = vmatpush1.bf16.msra.mxu1 %v4377_v19  ;;  %v4499_v19 = vld [vmem:[%s6052_s3] ss:$8 sps:$4 sm:$0xff]  }
 0x138   :  { %2836 = vmatpush1.bf16.msra.mxu0 %v4380_v21  ;;  %2632 = vmatprep.subr.bf16.mxu1 %v4385_v22  ;;  %v4501_v21 = vld [vmem:[%s6052_s3 + $0x4] ss:$8 sps:$4 sm:$0xff]   ;;  %v4504_v22 = vld [vmem:[%s6052_s3 + $0x14] ss:$8 sps:$4 sm:$0xff]  }
 0x139   :  { %2837 = vmatprep.subr.bf16.mxu0 %v4388_v23  ;;  %v4470_v23 = vld [vmem:[%s6050_s1 + $0xb70] ss:$8 sps:$4 sm:$0xff]  }
 0x13b   :  { %2633 = vmatpush1.bf16.msra.mxu1 %v4383_v26  ;;  %v4502_v26 = vld [vmem:[%s6052_s3 + $0x10] ss:$8 sps:$4 sm:$0xff]  }
 0x13c   :  { %2838 = vmatpush1.bf16.msra.mxu0 %v4386_v18  ;;  %2634 = vmatprep.subr.bf16.mxu1 %v4391_v28  ;;  %v4475_v18 = vld [vmem:[%s6050_s1 + $0xb84] ss:$8 sps:$4 sm:$0xff]  }
 0x13d   :  { %2839 = vmatprep.subr.bf16.mxu0 %v4394_v29  ;;  %v4507_v28 = vld [vmem:[%s6052_s3 + $0x24] ss:$8 sps:$4 sm:$0xff]   ;;  %v4473_v29 = vld [vmem:[%s6050_s1 + $0xb80] ss:$8 sps:$4 sm:$0xff]  }
 0x13f   :  { %2635 = vmatpush1.bf16.msra.mxu1 %v4389_v30  ;;  %v4505_v30 = vld [vmem:[%s6052_s3 + $0x20] ss:$8 sps:$4 sm:$0xff]  }
 0x140   :  { %2840 = vmatpush1.bf16.msra.mxu0 %v4392_v31  ;;  %3140 = vmatprep.subr.bf16.mxu1 %v4501_v21  ;;  %v4478_v31 = vld [vmem:[%s6050_s1 + $0xb94] ss:$8 sps:$4 sm:$0xff]  }
 0x141   :  { %2850 = vmatprep.subr.bf16.mxu0 %v4401_v32  ;;  %v4510_v32 = vld [vmem:[%s6052_s3 + $0x34] ss:$8 sps:$4 sm:$0xff]  }
 0x142   :  { %2637 = vmatmul.mubr.bf16.vlgmr.msra.gmra.mrb[0].mxu1 %v3383_v24  ;;  %v4508_v24 = vld [vmem:[%s6052_s3 + $0x30] ss:$8 sps:$4 sm:$0xff]  }
 0x143   :  { %2842 = vmatmul.mubr.bf16.vlgmr.msra.gmra.mrb[0].mxu0 %v3393_v25  ;;  %3141 = vmatpush1.bf16.msra.mxu1 %v4499_v19  ;;  %v4481_v25 = vld [vmem:[%s6050_s1 + $0xba4] ss:$8 sps:$4 sm:$0xff]  }
 0x144   :  { %2851 = vmatpush1.bf16.msra.mxu0 %v4399_v34  ;;  %2882 = vmatprep.mubr.bf16.mxu0 %v3396_v35  ;;  %v4513_v34 = vld [vmem:[%s6052_s3 + $0x44] ss:$8 sps:$4 sm:$0xff]   ;;  %v4479_v35 = vld [vmem:[%s6050_s1 + $0xba0] ss:$8 sps:$4 sm:$0xff]  }
 0x145   :  { %2852 = vmatprep.subr.bf16.mxu0 %v4404_v36  ;;  %3142 = vmatprep.subr.bf16.mxu1 %v4504_v22  ;;  %v4511_v36 = vld [vmem:[%s6052_s3 + $0x40] ss:$8 sps:$4 sm:$0xff]  }
 0x147   :  { %3143 = vmatpush1.bf16.msra.mxu1 %v4502_v26 }
 0x148   :  { %2853 = vmatpush1.bf16.msra.mxu0 %v4402_v20  ;;  %3144 = vmatprep.subr.bf16.mxu1 %v4507_v28  ;;  %v4484_v20 = vld [vmem:[%s6050_s1 + $0xbb4] ss:$8 sps:$4 sm:$0xff]  }
 0x149   :  { %2854 = vmatprep.subr.bf16.mxu0 %v4407_v27  ;;  %v4516_v27 = vld [vmem:[%s6052_s3 + $0x54] ss:$8 sps:$4 sm:$0xff]  }
 0x14b   :  { %3145 = vmatpush1.bf16.msra.mxu1 %v4505_v30 }
 0x14c   :  { %2855 = vmatpush1.bf16.msra.mxu0 %v4405_v37  ;;  %3146 = vmatprep.subr.bf16.mxu1 %v4510_v32  ;;  %v4482_v37 = vld [vmem:[%s6050_s1 + $0xbb0] ss:$8 sps:$4 sm:$0xff]  }
 0x14d   :  { %2856 = vmatprep.subr.bf16.mxu0 %v4410_v38  ;;  %v4514_v38 = vld [vmem:[%s6052_s3 + $0x50] ss:$8 sps:$4 sm:$0xff]  }
 0x14f   :  { %3147 = vmatpush1.bf16.msra.mxu1 %v4508_v24  ;;  %v4550_v24 = vld [vmem:[%s6054_s5 + $0x8] sm:$0xff]  }
 0x150   :  { %2857 = vmatpush1.bf16.msra.mxu0 %v4408_v39  ;;  %3148 = vmatprep.subr.bf16.mxu1 %v4513_v34  ;;  %v4487_v39 = vld [vmem:[%s6050_s1 + $0xbc4] ss:$8 sps:$4 sm:$0xff]   ;;  %v4552_v34 = vld [vmem:[%s6054_s5 + $0x10] sm:$0xff]  }
 0x151   :  { %2858 = vmatprep.subr.bf16.mxu0 %v4413_v40  ;;  %v4519_v40 = vld [vmem:[%s6052_s3 + $0x64] ss:$8 sps:$4 sm:$0xff]  }
 0x153   :  { %3149 = vmatpush1.bf16.msra.mxu1 %v4511_v36  ;;  %v4554_v36 = vld [vmem:[%s6054_s5 + $0x18] sm:$0xff]  }
 0x154   :  { %2859 = vmatpush1.bf16.msra.mxu0 %v4411_v41  ;;  %3150 = vmatprep.subr.bf16.mxu1 %v4516_v27  ;;  %v4485_v41 = vld [vmem:[%s6050_s1 + $0xbc0] ss:$8 sps:$4 sm:$0xff]  }
 0x155   :  { %2860 = vmatprep.subr.bf16.mxu0 %v4416_v42  ;;  %v4517_v42 = vld [vmem:[%s6052_s3 + $0x60] ss:$8 sps:$4 sm:$0xff]  }
 0x156   :  { %v4556_v27 = vld [vmem:[%s6054_s5 + $0x20] sm:$0xff]  }
 0x157   :  { %3151 = vmatpush1.bf16.msra.mxu1 %v4514_v38  ;;  %v4558_v38 = vld [vmem:[%s6054_s5 + $0x28] sm:$0xff]  }
 0x158   :  { %2861 = vmatpush1.bf16.msra.mxu0 %v4414_v43  ;;  %v4490_v43 = vld [vmem:[%s6050_s1 + $0xbd4] ss:$8 sps:$4 sm:$0xff]   ;;  %3152 = vmatprep.subr.bf16.mxu1 %v4519_v40 }
 0x159   :  { %2862 = vmatprep.subr.bf16.mxu0 %v4419_v44  ;;  %v4522_v44 = vld [vmem:[%s6052_s3 + $0x74] ss:$8 sps:$4 sm:$0xff]  }
 0x15a   :  { %v4560_v40 = vld [vmem:[%s6054_s5 + $0x30] sm:$0xff]  }
 0x15b   :  { %3153 = vmatpush1.bf16.msra.mxu1 %v4517_v42  ;;  %v4562_v42 = vld [vmem:[%s6054_s5 + $0x38] sm:$0xff]  }
 0x15c   :  { %2863 = vmatpush1.bf16.msra.mxu0 %v4417_v45  ;;  %v4488_v45 = vld [vmem:[%s6050_s1 + $0xbd0] ss:$8 sps:$4 sm:$0xff]   ;;  %3154 = vmatprep.subr.bf16.mxu1 %v4522_v44 }
 0x15d   :  { %2864 = vmatprep.subr.bf16.mxu0 %v4422_v46  ;;  %v4520_v46 = vld [vmem:[%s6052_s3 + $0x70] ss:$8 sps:$4 sm:$0xff]  }
 0x15f   :  { %3155 = vmatpush1.bf16.msra.mxu1 %v4520_v46 }
 0x160   :  { %2865 = vmatpush1.bf16.msra.mxu0 %v4420_v47  ;;  %v4493_v47 = vld [vmem:[%s6050_s1 + $0xbe4] ss:$8 sps:$4 sm:$0xff]  }
 0x161   :  { %2866 = vmatprep.subr.bf16.mxu0 %v4425_v48  ;;  %v4525_v48 = vld [vmem:[%s6052_s3 + $0x84] ss:$8 sps:$4 sm:$0xff]  }
 0x162   :  { %3156 = vmatprep.subr.bf16.mxu1 %v4525_v48 }
 0x164   :  { %2867 = vmatpush1.bf16.msra.mxu0 %v4423_v49  ;;  %v4491_v49 = vld [vmem:[%s6050_s1 + $0xbe0] ss:$8 sps:$4 sm:$0xff]  }
 0x165   :  { %2868 = vmatprep.subr.bf16.mxu0 %v4428_v50  ;;  %v4523_v50 = vld [vmem:[%s6052_s3 + $0x80] ss:$8 sps:$4 sm:$0xff]  }
 0x166   :  { %3157 = vmatpush1.bf16.msra.mxu1 %v4523_v50 }
 0x168   :  { %2869 = vmatpush1.bf16.msra.mxu0 %v4426_v51  ;;  %v4496_v51 = vld [vmem:[%s6050_s1 + $0xbf4] ss:$8 sps:$4 sm:$0xff]  }
 0x169   :  { %2870 = vmatprep.subr.bf16.mxu0 %v4431_v52  ;;  %v4528_v52 = vld [vmem:[%s6052_s3 + $0x94] ss:$8 sps:$4 sm:$0xff]  }
 0x16a   :  { %3158 = vmatprep.subr.bf16.mxu1 %v4528_v52 }
 0x16c   :  { %2871 = vmatpush1.bf16.msra.mxu0 %v4429_v53  ;;  %v4494_v53 = vld [vmem:[%s6050_s1 + $0xbf0] ss:$8 sps:$4 sm:$0xff]  }
 0x16d   :  { %2872 = vmatprep.subr.bf16.mxu0 %v4434_v54  ;;  %v4526_v54 = vld [vmem:[%s6052_s3 + $0x90] ss:$8 sps:$4 sm:$0xff]  }
 0x16e   :  { %3159 = vmatpush1.bf16.msra.mxu1 %v4526_v54 }
 0x170   :  { %2873 = vmatpush1.bf16.msra.mxu0 %v4432_v55  ;;  %v4531_v55 = vld [vmem:[%s6052_s3 + $0xa4] ss:$8 sps:$4 sm:$0xff]  }
 0x171   :  { %2874 = vmatprep.subr.bf16.mxu0 %v4437_v56  ;;  %v3397_v56 = vcombine.low %v5783_v1, %v5783_v1  ;;  %3160 = vmatprep.subr.bf16.mxu1 %v4531_v55 }
 0x174   :  { %2875 = vmatpush1.bf16.msra.mxu0 %v4435_v57  ;;  %v4529_v57 = vld [vmem:[%s6052_s3 + $0xa0] ss:$8 sps:$4 sm:$0xff]  }
 0x175   :  { %2876 = vmatprep.subr.bf16.mxu0 %v4440_v58  ;;  %v4534_v58 = vld [vmem:[%s6052_s3 + $0xb4] ss:$8 sps:$4 sm:$0xff]   ;;  %3161 = vmatpush1.bf16.msra.mxu1 %v4529_v57 }
 0x176   :  { %3162 = vmatprep.subr.bf16.mxu1 %v4534_v58  ;;  %v3815_v58 = vld [vmem:[%s6055_s6] ss:$0 sm:$0xff] }
 0x178   :  { %2877 = vmatpush1.bf16.msra.mxu0 %v4438_v59  ;;  %v4532_v59 = vld [vmem:[%s6052_s3 + $0xb0] ss:$8 sps:$4 sm:$0xff]  }
 0x179   :  { %2878 = vmatprep.subr.bf16.mxu0 %v4443_v60  ;;  %3163 = vmatpush1.bf16.msra.mxu1 %v4532_v59 }
 0x17c   :  { %2879 = vmatpush1.bf16.msra.mxu0 %v4441_v61  ;;  %v4537_v61 = vld [vmem:[%s6052_s3 + $0xc4] ss:$8 sps:$4 sm:$0xff]  }
 0x17d   :  { %2880 = vmatprep.subr.bf16.mxu0 %v4446_v62  ;;  %3164 = vmatprep.subr.bf16.mxu1 %v4537_v61 }
 0x180   :  { %2881 = vmatpush1.bf16.msra.mxu0 %v4444_v63  ;;  %v4535_v63 = vld [vmem:[%s6052_s3 + $0xc0] ss:$8 sps:$4 sm:$0xff]  }
 0x181   :  { %2891 = vmatprep.subr.bf16.mxu0 %v4451_v0  ;;  %3165 = vmatpush1.bf16.msra.mxu1 %v4535_v63 }
 0x183   :  { %2883 = vmatmul.mubr.bf16.vlgmr.msra.gmra.mrb[0].mxu0 %v3395_v2  ;;  %v4540_v2 = vld [vmem:[%s6052_s3 + $0xd4] ss:$8 sps:$4 sm:$0xff]  }
 0x184   :  { %2892 = vmatpush1.bf16.msra.mxu0 %v4449_v3  ;;  %2923 = vmatprep.mubr.bf16.mxu0 %v3398_v4  ;;  %v4538_v3 = vld [vmem:[%s6052_s3 + $0xd0] ss:$8 sps:$4 sm:$0xff]   ;;  %v4543_v4 = vld [vmem:[%s6052_s3 + $0xe4] ss:$8 sps:$4 sm:$0xff]  }
 0x185   :  { %2893 = vmatprep.subr.bf16.mxu0 %v4454_v5  ;;  %3166 = vmatprep.subr.bf16.mxu1 %v4540_v2  ;;  %v4541_v5 = vld [vmem:[%s6052_s3 + $0xe0] ss:$8 sps:$4 sm:$0xff]  }
 0x186   :  { %3167 = vmatpush1.bf16.msra.mxu1 %v4538_v3 }
 0x187   :  { %3168 = vmatprep.subr.bf16.mxu1 %v4543_v4 }
 0x188   :  { %2894 = vmatpush1.bf16.msra.mxu0 %v4452_v6  ;;  %v4546_v6 = vld [vmem:[%s6052_s3 + $0xf4] ss:$8 sps:$4 sm:$0xff]  }
 0x189   :  { %2895 = vmatprep.subr.bf16.mxu0 %v4457_v7  ;;  %v4544_v7 = vld [vmem:[%s6052_s3 + $0xf0] ss:$8 sps:$4 sm:$0xff]  }
 0x18a   :  { %3169 = vmatpush1.bf16.msra.mxu1 %v4541_v5 }
 0x18b   :  { %3170 = vmatprep.subr.bf16.mxu1 %v4546_v6 }
 0x18c   :  { %2896 = vmatpush1.bf16.msra.mxu0 %v4455_v8  ;;  %v4547_v8 = vld [vmem:[%s6054_s5 + $0x40] sm:$0xff]  }
 0x18d   :  { %2897 = vmatprep.subr.bf16.mxu0 %v4460_v9  ;;  %v426_v9 = vlaneseq }
 0x18e   :  { %3171 = vmatpush1.bf16.msra.mxu1 %v4544_v7 }
 0x18f   :  { %3832 = vmatprep.subr.bf16.mxu1 %v4547_v8 }
 0x190   :  { %2898 = vmatpush1.bf16.msra.mxu0 %v4458_v10  ;;  %v427_v10 = vshrl.u32 %v426_v9, 7 }
 0x191   :  { %2899 = vmatprep.subr.bf16.mxu0 %v4463_v11 }
 0x192   :  { %v428_v11 = vsub.s32 0, %v427_v10 }
 0x194   :  { %2900 = vmatpush1.bf16.msra.mxu0 %v4461_v12  ;;  %v424_v12 = vld [vmem:[%s6051_s2] sm:$0x3] }
 0x195   :  { %2901 = vmatprep.subr.bf16.mxu0 %v4466_v13  ;;  %v432_v13 = vsub.s32 1, %v427_v10 }
 0x198   :  { %2902 = vmatpush1.bf16.msra.mxu0 %v4464_v14  ;;  %v429_v14 = vrot.slane %v424_v12, %v428_v11 }
 0x199   :  { %2903 = vmatprep.subr.bf16.mxu0 %v4469_v15  ;;  %v433_v15 = vrot.slane %v424_v12, %v432_v13 }
 0x19c   :  { %2904 = vmatpush1.bf16.msra.mxu0 %v4467_v16 }
 0x19d   :  { %2905 = vmatprep.subr.bf16.mxu0 %v4472_v17 }
 0x1a0   :  { %2906 = vmatpush1.bf16.msra.mxu0 %v4470_v23 }
 0x1a1   :  { %2907 = vmatprep.subr.bf16.mxu0 %v4475_v18 }
 0x1a4   :  { %2908 = vmatpush1.bf16.msra.mxu0 %v4473_v29 }
 0x1a5   :  { %2909 = vmatprep.subr.bf16.mxu0 %v4478_v31  ;;  %v4548_v31 = vld [vmem:[%s6054_s5] sm:$0xff]  }
 0x1a8   :  { %2910 = vmatpush1.bf16.msra.mxu0 %v4476_v33  ;;  %v4549_v33 = vld [vmem:[%s6054_s5 + $0x48] sm:$0xff]  }
 0x1a9   :  { %2911 = vmatprep.subr.bf16.mxu0 %v4481_v25  ;;  %v4551_v25 = vld [vmem:[%s6054_s5 + $0x50] sm:$0xff]  }
 0x1ac   :  { %2912 = vmatpush1.bf16.msra.mxu0 %v4479_v35  ;;  %v4553_v35 = vld [vmem:[%s6054_s5 + $0x58] sm:$0xff]  }
 0x1ad   :  { %2913 = vmatprep.subr.bf16.mxu0 %v4484_v20  ;;  %v4555_v20 = vld [vmem:[%s6054_s5 + $0x60] sm:$0xff]  }
 0x1b0   :  { %2914 = vmatpush1.bf16.msra.mxu0 %v4482_v37  ;;  %v4557_v37 = vld [vmem:[%s6054_s5 + $0x68] sm:$0xff]  }
 0x1b1   :  { %2915 = vmatprep.subr.bf16.mxu0 %v4487_v39  ;;  %v4559_v39 = vld [vmem:[%s6054_s5 + $0x70] sm:$0xff]  }
 0x1b4   :  { %2916 = vmatpush1.bf16.msra.mxu0 %v4485_v41  ;;  %v4561_v41 = vld [vmem:[%s6054_s5 + $0x78] sm:$0xff]  }
 0x1b5   :  { %2917 = vmatprep.subr.bf16.mxu0 %v4490_v43  ;;  %v2968_v43 = vld [vmem:[%s6053_s4] sm:$0x3] }
 0x1b6   :  { %v2973_v44 = vrot.slane %v2968_v43, %v428_v11 }
 0x1b8   :  { %2918 = vmatpush1.bf16.msra.mxu0 %v4488_v45  ;;  %v2977_v45 = vrot.slane %v2968_v43, %v432_v13 }
 0x1b9   :  { %2919 = vmatprep.subr.bf16.mxu0 %v4493_v47 }
 0x1bc   :  { %2920 = vmatpush1.bf16.msra.mxu0 %v4491_v49 }
 0x1bd   :  { %2921 = vmatprep.subr.bf16.mxu0 %v4496_v51 }
 0x1c0   :  { %2922 = vmatpush1.bf16.msra.mxu0 %v4494_v53 }
 0x1c3   :  { %2924 = vmatmul.mubr.bf16.vlgmr.msra.gmra.mrb[0].mxu0 %v3397_v56 }
 0x215   :  { %v2638_v60 = vpop.f32.mrb[0].mxu1 }
 0x216   :  { %v2640_v62 = vpop.f32.mrb[1].mxu1  ;;  %v3854_v16 = vadd.f32 %v2638_v60, %v429_v14 }
 0x217   :  { %v2642_v0 = vpop.f32.mrb[2].mxu1  ;;  %v3856_v17 = vadd.f32 %v2640_v62, %v433_v15 }
 0x218   :  { %v2643_v1 = vpop.f32.mrb[3].mxu1 }
 0x296   :  { %v2925_v19 = vpop.f32.mrb[0].mxu0 }
 0x297   :  { %v3855_v21 = vadd.f32 %v3854_v16, %v2925_v19  ;;  %v2927_v22 = vpop.f32.mrb[1].mxu0 }
 0x298   :  { %v3857_v23 = vadd.f32 %v3856_v17, %v2927_v22  ;;  %v2929_v26 = vpop.f32.mrb[2].mxu0 }
 0x299   :  { %4563 = vtanh.f32 %v3855_v21  ;;  %v2930_v18 = vpop.f32.mrb[3].mxu0 }
 0x29a   :  { %4565 = vtanh.f32 %v3857_v23 }
 0x2a3   :  { %v4564_v28 = vpop.eup %4563 }
 0x2a4   :  { %v4566_v29 = vpop.eup %4565  ;;  %v2934_v32 = vpack.c.bf16 %v4564_v28, %v4564_v28 }
 0x2a5   :  { %v2935_v30 = vpack.c.bf16 %v4566_v29, %v4566_v29 }
 0x2a7   :  { %3172 = vmatprep.mubr.bf16.mxu1 %v2935_v30 }
 0x2a8   :  { %3173 = vmatmul.mubr.bf16.vlgmr.msra.gmra.mrb[4].mxu1 %v2934_v32 }
 0x2a9   :  { %3833 = vmatpush3.bf16.msra.mxu1 %v4548_v31 }
 0x2aa   :  { %3834 = vmatprep.subr.bf16.mxu1 %v4549_v33 }
 0x2ad   :  { %3835 = vmatpush3.bf16.msra.mxu1 %v4550_v24 }
 0x2ae   :  { %3836 = vmatprep.subr.bf16.mxu1 %v4551_v25 }
 0x2b1   :  { %3837 = vmatpush3.bf16.msra.mxu1 %v4552_v34 }
 0x2b2   :  { %3838 = vmatprep.subr.bf16.mxu1 %v4553_v35 }
 0x2b5   :  { %3839 = vmatpush3.bf16.msra.mxu1 %v4554_v36 }
 0x2b6   :  { %3840 = vmatprep.subr.bf16.mxu1 %v4555_v20 }
 0x2b9   :  { %3841 = vmatpush3.bf16.msra.mxu1 %v4556_v27 }
 0x2ba   :  { %3842 = vmatprep.subr.bf16.mxu1 %v4557_v37 }
 0x2bd   :  { %3843 = vmatpush3.bf16.msra.mxu1 %v4558_v38 }
 0x2be   :  { %3844 = vmatprep.subr.bf16.mxu1 %v4559_v39 }
 0x2c1   :  { %3845 = vmatpush3.bf16.msra.mxu1 %v4560_v40 }
 0x2c2   :  { %3846 = vmatprep.subr.bf16.mxu1 %v4561_v41 }
 0x2c5   :  { %3847 = vmatpush3.bf16.msra.mxu1 %v4562_v42 }
 0x37b   :  { %v3174_v46 = vpop.f32.mrb[4].mxu1 }
 0x37c   :  { %v3175_v47 = vadd.f32 %v3174_v46, %v2973_v44  ;;  %v3176_v48 = vpop.f32.mrb[5].mxu1 }
 0x37d   :  { %v3177_v49 = vadd.f32 %v3176_v48, %v2977_v45  ;;  %v3178_v50 = vpop.f32.mrb[6].mxu1 }
 0x37e   :  { %4567 = vtanh.f32 %v3175_v47  ;;  %v3179_v51 = vpop.f32.mrb[7].mxu1 }
 0x37f   :  { %4569 = vtanh.f32 %v3177_v49 }
 0x388   :  { %v4568_v52 = vpop.eup %4567 }
 0x389   :  { %v4570_v53 = vpop.eup %4569  ;;  %v3183_v55 = vpack.c.bf16 %v4568_v52, %v4568_v52 }
 0x38a   :  { %v3184_v54 = vpack.c.bf16 %v4570_v53, %v4570_v53 }
 0x38c   :  { %3352 = vmatprep.mubr.bf16.mxu1 %v3184_v54 }
 0x38d   :  { %3353 = vmatmul.mubr.bf16.vlgmr.msra.gmra.mrb[8].mxu1 %v3183_v55 }
 0x460   :  { %v3848_v56 = vpop.f32.mrb[8].mxu1 }
 0x461   :  { %v3849_v57 = vpop.f32.mrb[9].mxu1 }
 0x462   :  { %v3850_v59 = vadd.f32 %v3849_v57, %v3848_v56  ;;  %v3851_v60 = vpop.f32.mrb[10].mxu1 }
 0x463   :  { %v3852_v61 = vpop.f32.mrb[11].mxu1 }
 0x464   :  { %v3355_v62 = vadd.f32 %v3850_v59, %v3815_v58 }
 0x466   :  { %3360 = vst [vmem:[#allocation2] sm:$0xff] %v3355_v62 }
 0x467   :  { %4582 = shalt.err (!%p4579_p4)
}
 0x468   :  { %s4583_s10 = scalar_lea.hbm %s6056_s7, 128 }
 0x469   :  { %p4584_p5 = scmp.ne.s32.totalorder %s6056_s7, %s4583_s10  ;;  %p4587_p6 = scmp.lt.u32.totalorder %s4583_s10, %s6056_s7 }
 0x46b   :  { %p4589_p7 = pnand %p4587_p6, %p4584_p5 }
 0x46d   :  { %4592 = shalt.err (!%p4589_p7)
}
 0x46e   :  { %3370 = dma.vmem_to_hbm [thread:$0]  %s3368_s29, 128, %s6056_s7, [#allocation3]  }
 0x46f   :  { %4593 = dma.done.wait [#allocation3], 128  }
 0x470   :  { %4594 = vsyncadd [#allocation3], 4294967168 }
 0x471   :  { %3374 = vsyncpa [#allocation3], 1 }

</bundles_post_ra>
